<compile_context>
chip_gen: v7x
topology: tpu7x:2x2x1
jax: 0.10.0
libtpu: 0.0.40
codegen_flags: <defaults>
</compile_context>

<pallas_src>
import functools

import jax
import jax.numpy as jnp
from jax.experimental import pallas as pl
from jax.experimental.pallas import tpu as pltpu


# ----------------------------------------------------------------------------
# Fused unfold + linear kernel (one batch element per grid step)
# ----------------------------------------------------------------------------
def _soft_split_kernel(x_ref, w_ref, b_ref, o_ref, *, Ho, Wo, k):
    """
    x_ref: (1, Hp, Wp, C)   halo-padded NHWC input tile
    w_ref: (k*k, C, Op)     linear weight split per kernel tap (O zero-padded)
    b_ref: (1, Op)          bias (O zero-padded)
    o_ref: (1, Ho*Wo, Op)   output tile
    """
    xt = x_ref[0]                                    # (Hp, Wp, C)
    C = xt.shape[-1]
    Op = o_ref.shape[-1]
    acc = jnp.zeros((Ho * Wo, Op), jnp.float32)
    # k*k taps: each is a (L, C) @ (C, Op) MXU dot on a shifted slice of the
    # halo tile; f32 accumulation.  (If inputs are bf16, the dot still
    # accumulates in f32 via preferred_element_type.)
    for ki in range(k):
        for kj in range(k):
            xs = xt[ki:ki + Ho, kj:kj + Wo, :].reshape(Ho * Wo, C)
            acc = acc + jnp.dot(xs, w_ref[ki * k + kj],
                                preferred_element_type=jnp.float32)
    o_ref[0] = (acc + b_ref[...]).astype(o_ref.dtype)


# ----------------------------------------------------------------------------
# SoftSplit forward
# ----------------------------------------------------------------------------
def soft_split(x, weight, bias, *, kernel_size=3, stride=1):
    """
    x:      (N, C, H, W)   NCHW, like PyTorch
    weight: (O, C*k*k)     torch nn.Linear layout (Unfold order c*k*k + ki*k + kj)
    bias:   (O,)
    returns (N, L, O) with L = H_out * W_out
    """
    # TODO(synk): stride > 1 and the out_channels=None (nn.Identity) tail are
    # not implemented in the fused kernel; the module defaults (k=3, stride=1,
    # Linear head) are covered.
    assert stride == 1, "fused kernel implements the default stride=1"
    N, C, H, W = x.shape
    k = kernel_size
    pad = (k - 1) // 2
    Ho = H + 2 * pad - k + 1
    Wo = W + 2 * pad - k + 1
    L = Ho * Wo
    O = weight.shape[0]

    # Lightweight XLA-side prep (single pass over x, NOT the 9x im2col).
    x_nhwc = jnp.transpose(x, (0, 2, 3, 1))                        # (N, H, W, C)
    xp = jnp.pad(x_nhwc, ((0, 0), (pad, pad), (pad, pad), (0, 0)))
    Hp, Wp = H + 2 * pad, W + 2 * pad

    # Reorder weight once: w9[ki*k + kj, c, o] == weight[o, c*k*k + ki*k + kj]
    w9 = jnp.transpose(weight.reshape(O, C, k, k), (2, 3, 1, 0)).reshape(k * k, C, O)

    # Lane-dense output: zero-pad O up to a multiple of 128, slice afterwards.
    Op = ((O + 127) // 128) * 128
    if Op != O:
        w9 = jnp.pad(w9, ((0, 0), (0, 0), (0, Op - O)))
        b = jnp.pad(bias, (0, Op - O))
    else:
        b = bias
    b2 = b.reshape(1, Op)

    kern = functools.partial(_soft_split_kernel, Ho=Ho, Wo=Wo, k=k)
    bytes_accessed = 4 * (N * Hp * Wp * C + k * k * C * Op + Op + N * L * Op)

    out = pl.pallas_call(
        kern,
        out_shape=jax.ShapeDtypeStruct((N, L, Op), x.dtype),
        grid_spec=pltpu.PrefetchScalarGridSpec(
            num_scalar_prefetch=0,
            grid=(N,),
            in_specs=[
                pl.BlockSpec((1, Hp, Wp, C), lambda n: (n, 0, 0, 0)),  # per-batch halo tile
                pl.BlockSpec((k * k, C, Op), lambda n: (0, 0, 0)),     # grid-invariant weight
                pl.BlockSpec((1, Op), lambda n: (0, 0)),               # grid-invariant bias
            ],
            out_specs=pl.BlockSpec((1, L, Op), lambda n: (n, 0, 0)),
        ),
        compiler_params=pltpu.CompilerParams(
            dimension_semantics=("parallel",),   # shard batch across TCs on v7x
        ),
        cost_estimate=pl.CostEstimate(
            flops=2 * N * L * (C * k * k) * Op,
            transcendentals=0,
            bytes_accessed=bytes_accessed,
        ),
    )(xp, w9, b2)

    return out[..., :O] if Op != O else out


# ----------------------------------------------------------------------------
# Pure-JAX reference matching torch.nn.Unfold feature ordering (for the test)
# ----------------------------------------------------------------------------
def _unfold_reference(x, kernel_size=3, stride=1):
    N, C, H, W = x.shape
    pad = (kernel_size - 1) // 2
    xp = jnp.pad(x, ((0, 0), (0, 0), (pad, pad), (pad, pad)))
    Ho = (H + 2 * pad - kernel_size) // stride + 1
    Wo = (W + 2 * pad - kernel_size) // stride + 1
    cols = []
    for ki in range(kernel_size):
        for kj in range(kernel_size):
            cols.append(
                xp[:, :, ki:ki + stride * Ho:stride, kj:kj + stride * Wo:stride]
            )
    pat = jnp.stack(cols, axis=2).reshape(N, C * kernel_size ** 2, Ho * Wo)
    return jnp.transpose(pat, (0, 2, 1))   # (N, L, C*k*k), torch feature order


if __name__ == "__main__":
    N, C, H, W = 2, 4, 16, 16
    kernel_size, stride = 3, 1
    out_channels = 32
    K = C * kernel_size ** 2  # 36

    key = jax.random.PRNGKey(0)
    kx, kw, kb = jax.random.split(key, 3)

    x = jax.random.normal(kx, (N, C, H, W), dtype=jnp.float32)
    bound = 1.0 / (K ** 0.5)
    weight = jax.random.uniform(kw, (out_channels, K), jnp.float32, -bound, bound)
    bias = jax.random.uniform(kb, (out_channels,), jnp.float32, -bound, bound)

    fn = jax.jit(functools.partial(soft_split, kernel_size=kernel_size, stride=stride))
    out = jax.block_until_ready(fn(x, weight, bias))

    ref = _unfold_reference(x, kernel_size, stride) @ weight.T + bias
    assert out.shape == (N, H * W, out_channels), out.shape
    assert jnp.allclose(out, ref, atol=1e-5, rtol=1e-5), float(
        jnp.max(jnp.abs(out - ref))
    )

    print("KERNEL_OK")
</pallas_src>

<mosaic_0001>
module attributes {stable_mosaic.version = 11 : i64} {
  func.func @_soft_split_kernel(%arg0: i32, %arg1: memref<1x18x18x4xf32, #tpu.memory_space<vmem>>, %arg2: memref<9x4x128xf32, #tpu.memory_space<vmem>>, %arg3: memref<1x128xf32, #tpu.memory_space<vmem>>, %arg4: memref<1x256x128xf32, #tpu.memory_space<vmem>>) attributes {dimension_semantics = [#tpu.dimension_semantics<parallel>], iteration_bounds = array<i64: 2>, scalar_prefetch = 0 : i64, scratch_operands = 0 : i64, tpu.core_type = #tpu.core_type<tc>, window_params = [{transform_indices = @transform_0, window_bounds = array<i64: 1, 18, 18, 4>}, {pipeline_mode = #tpu.pipeline_mode<synchronous>, transform_indices = @transform_1, window_bounds = array<i64: 9, 4, 128>}, {pipeline_mode = #tpu.pipeline_mode<synchronous>, transform_indices = @transform_2, window_bounds = array<i64: 1, 128>}, {transform_indices = @transform_3, window_bounds = array<i64: 1, 256, 128>}]} {
    %c0 = arith.constant 0 : index
    %c0_0 = arith.constant 0 : index
    %c0_1 = arith.constant 0 : index
    %c0_2 = arith.constant 0 : index
    %0 = vector.load %arg1[%c0, %c0_0, %c0_1, %c0_2] : memref<1x18x18x4xf32, #tpu.memory_space<vmem>>, vector<1x18x18x4xf32>
    %1 = vector.shape_cast %0 : vector<1x18x18x4xf32> to vector<18x18x4xf32>
    %cst = arith.constant 0.000000e+00 : f32
    %2 = vector.broadcast %cst : f32 to vector<256x128xf32>
    %3 = vector.extract_strided_slice %1 {offsets = [0, 0, 0], sizes = [16, 16, 4], strides = [1, 1, 1]} : vector<18x18x4xf32> to vector<16x16x4xf32>
    %4 = vector.shape_cast %3 : vector<16x16x4xf32> to vector<256x4xf32>
    %c0_3 = arith.constant 0 : index
    %c0_4 = arith.constant 0 : index
    %c0_5 = arith.constant 0 : index
    %5 = vector.load %arg2[%c0_3, %c0_4, %c0_5] : memref<9x4x128xf32, #tpu.memory_space<vmem>>, vector<1x4x128xf32>
    %6 = vector.shape_cast %5 : vector<1x4x128xf32> to vector<4x128xf32>
    %cst_6 = arith.constant dense<0.000000e+00> : vector<256x128xf32>
    %7 = tpu.matmul %4, %6, %cst_6 {dimension_numbers = #tpu.dot_dimension_numbers<[1], [0], [0], [1], [0, 0, 1, 1], [], []>} : vector<256x4xf32>, vector<4x128xf32>, vector<256x128xf32> -> vector<256x128xf32>
    %8 = arith.addf %2, %7 : vector<256x128xf32>
    %9 = vector.extract_strided_slice %1 {offsets = [0, 1, 0], sizes = [16, 16, 4], strides = [1, 1, 1]} : vector<18x18x4xf32> to vector<16x16x4xf32>
    %10 = vector.shape_cast %9 : vector<16x16x4xf32> to vector<256x4xf32>
    %c1 = arith.constant 1 : index
    %c0_7 = arith.constant 0 : index
    %c0_8 = arith.constant 0 : index
    %11 = vector.load %arg2[%c1, %c0_7, %c0_8] : memref<9x4x128xf32, #tpu.memory_space<vmem>>, vector<1x4x128xf32>
    %12 = vector.shape_cast %11 : vector<1x4x128xf32> to vector<4x128xf32>
    %cst_9 = arith.constant dense<0.000000e+00> : vector<256x128xf32>
    %13 = tpu.matmul %10, %12, %cst_9 {dimension_numbers = #tpu.dot_dimension_numbers<[1], [0], [0], [1], [0, 0, 1, 1], [], []>} : vector<256x4xf32>, vector<4x128xf32>, vector<256x128xf32> -> vector<256x128xf32>
    %14 = arith.addf %8, %13 : vector<256x128xf32>
    %15 = vector.extract_strided_slice %1 {offsets = [0, 2, 0], sizes = [16, 16, 4], strides = [1, 1, 1]} : vector<18x18x4xf32> to vector<16x16x4xf32>
    %16 = vector.shape_cast %15 : vector<16x16x4xf32> to vector<256x4xf32>
    %c2 = arith.constant 2 : index
    %c0_10 = arith.constant 0 : index
    %c0_11 = arith.constant 0 : index
    %17 = vector.load %arg2[%c2, %c0_10, %c0_11] : memref<9x4x128xf32, #tpu.memory_space<vmem>>, vector<1x4x128xf32>
    %18 = vector.shape_cast %17 : vector<1x4x128xf32> to vector<4x128xf32>
    %cst_12 = arith.constant dense<0.000000e+00> : vector<256x128xf32>
    %19 = tpu.matmul %16, %18, %cst_12 {dimension_numbers = #tpu.dot_dimension_numbers<[1], [0], [0], [1], [0, 0, 1, 1], [], []>} : vector<256x4xf32>, vector<4x128xf32>, vector<256x128xf32> -> vector<256x128xf32>
    %20 = arith.addf %14, %19 : vector<256x128xf32>
    %21 = vector.extract_strided_slice %1 {offsets = [1, 0, 0], sizes = [16, 16, 4], strides = [1, 1, 1]} : vector<18x18x4xf32> to vector<16x16x4xf32>
    %22 = vector.shape_cast %21 : vector<16x16x4xf32> to vector<256x4xf32>
    %c3 = arith.constant 3 : index
    %c0_13 = arith.constant 0 : index
    %c0_14 = arith.constant 0 : index
    %23 = vector.load %arg2[%c3, %c0_13, %c0_14] : memref<9x4x128xf32, #tpu.memory_space<vmem>>, vector<1x4x128xf32>
    %24 = vector.shape_cast %23 : vector<1x4x128xf32> to vector<4x128xf32>
    %cst_15 = arith.constant dense<0.000000e+00> : vector<256x128xf32>
    %25 = tpu.matmul %22, %24, %cst_15 {dimension_numbers = #tpu.dot_dimension_numbers<[1], [0], [0], [1], [0, 0, 1, 1], [], []>} : vector<256x4xf32>, vector<4x128xf32>, vector<256x128xf32> -> vector<256x128xf32>
    %26 = arith.addf %20, %25 : vector<256x128xf32>
    %27 = vector.extract_strided_slice %1 {offsets = [1, 1, 0], sizes = [16, 16, 4], strides = [1, 1, 1]} : vector<18x18x4xf32> to vector<16x16x4xf32>
    %28 = vector.shape_cast %27 : vector<16x16x4xf32> to vector<256x4xf32>
    %c4 = arith.constant 4 : index
    %c0_16 = arith.constant 0 : index
    %c0_17 = arith.constant 0 : index
    %29 = vector.load %arg2[%c4, %c0_16, %c0_17] : memref<9x4x128xf32, #tpu.memory_space<vmem>>, vector<1x4x128xf32>
    %30 = vector.shape_cast %29 : vector<1x4x128xf32> to vector<4x128xf32>
    %cst_18 = arith.constant dense<0.000000e+00> : vector<256x128xf32>
    %31 = tpu.matmul %28, %30, %cst_18 {dimension_numbers = #tpu.dot_dimension_numbers<[1], [0], [0], [1], [0, 0, 1, 1], [], []>} : vector<256x4xf32>, vector<4x128xf32>, vector<256x128xf32> -> vector<256x128xf32>
    %32 = arith.addf %26, %31 : vector<256x128xf32>
    %33 = vector.extract_strided_slice %1 {offsets = [1, 2, 0], sizes = [16, 16, 4], strides = [1, 1, 1]} : vector<18x18x4xf32> to vector<16x16x4xf32>
    %34 = vector.shape_cast %33 : vector<16x16x4xf32> to vector<256x4xf32>
    %c5 = arith.constant 5 : index
    %c0_19 = arith.constant 0 : index
    %c0_20 = arith.constant 0 : index
    %35 = vector.load %arg2[%c5, %c0_19, %c0_20] : memref<9x4x128xf32, #tpu.memory_space<vmem>>, vector<1x4x128xf32>
    %36 = vector.shape_cast %35 : vector<1x4x128xf32> to vector<4x128xf32>
    %cst_21 = arith.constant dense<0.000000e+00> : vector<256x128xf32>
    %37 = tpu.matmul %34, %36, %cst_21 {dimension_numbers = #tpu.dot_dimension_numbers<[1], [0], [0], [1], [0, 0, 1, 1], [], []>} : vector<256x4xf32>, vector<4x128xf32>, vector<256x128xf32> -> vector<256x128xf32>
    %38 = arith.addf %32, %37 : vector<256x128xf32>
    %39 = vector.extract_strided_slice %1 {offsets = [2, 0, 0], sizes = [16, 16, 4], strides = [1, 1, 1]} : vector<18x18x4xf32> to vector<16x16x4xf32>
    %40 = vector.shape_cast %39 : vector<16x16x4xf32> to vector<256x4xf32>
    %c6 = arith.constant 6 : index
    %c0_22 = arith.constant 0 : index
    %c0_23 = arith.constant 0 : index
    %41 = vector.load %arg2[%c6, %c0_22, %c0_23] : memref<9x4x128xf32, #tpu.memory_space<vmem>>, vector<1x4x128xf32>
    %42 = vector.shape_cast %41 : vector<1x4x128xf32> to vector<4x128xf32>
    %cst_24 = arith.constant dense<0.000000e+00> : vector<256x128xf32>
    %43 = tpu.matmul %40, %42, %cst_24 {dimension_numbers = #tpu.dot_dimension_numbers<[1], [0], [0], [1], [0, 0, 1, 1], [], []>} : vector<256x4xf32>, vector<4x128xf32>, vector<256x128xf32> -> vector<256x128xf32>
    %44 = arith.addf %38, %43 : vector<256x128xf32>
    %45 = vector.extract_strided_slice %1 {offsets = [2, 1, 0], sizes = [16, 16, 4], strides = [1, 1, 1]} : vector<18x18x4xf32> to vector<16x16x4xf32>
    %46 = vector.shape_cast %45 : vector<16x16x4xf32> to vector<256x4xf32>
    %c7 = arith.constant 7 : index
    %c0_25 = arith.constant 0 : index
    %c0_26 = arith.constant 0 : index
    %47 = vector.load %arg2[%c7, %c0_25, %c0_26] : memref<9x4x128xf32, #tpu.memory_space<vmem>>, vector<1x4x128xf32>
    %48 = vector.shape_cast %47 : vector<1x4x128xf32> to vector<4x128xf32>
    %cst_27 = arith.constant dense<0.000000e+00> : vector<256x128xf32>
    %49 = tpu.matmul %46, %48, %cst_27 {dimension_numbers = #tpu.dot_dimension_numbers<[1], [0], [0], [1], [0, 0, 1, 1], [], []>} : vector<256x4xf32>, vector<4x128xf32>, vector<256x128xf32> -> vector<256x128xf32>
    %50 = arith.addf %44, %49 : vector<256x128xf32>
    %51 = vector.extract_strided_slice %1 {offsets = [2, 2, 0], sizes = [16, 16, 4], strides = [1, 1, 1]} : vector<18x18x4xf32> to vector<16x16x4xf32>
    %52 = vector.shape_cast %51 : vector<16x16x4xf32> to vector<256x4xf32>
    %c8 = arith.constant 8 : index
    %c0_28 = arith.constant 0 : index
    %c0_29 = arith.constant 0 : index
    %53 = vector.load %arg2[%c8, %c0_28, %c0_29] : memref<9x4x128xf32, #tpu.memory_space<vmem>>, vector<1x4x128xf32>
    %54 = vector.shape_cast %53 : vector<1x4x128xf32> to vector<4x128xf32>
    %cst_30 = arith.constant dense<0.000000e+00> : vector<256x128xf32>
    %55 = tpu.matmul %52, %54, %cst_30 {dimension_numbers = #tpu.dot_dimension_numbers<[1], [0], [0], [1], [0, 0, 1, 1], [], []>} : vector<256x4xf32>, vector<4x128xf32>, vector<256x128xf32> -> vector<256x128xf32>
    %56 = arith.addf %50, %55 : vector<256x128xf32>
    %c0_31 = arith.constant 0 : index
    %c0_32 = arith.constant 0 : index
    %57 = vector.load %arg3[%c0_31, %c0_32] : memref<1x128xf32, #tpu.memory_space<vmem>>, vector<1x128xf32>
    %58 = vector.broadcast %57 : vector<1x128xf32> to vector<256x128xf32>
    %59 = arith.addf %56, %58 : vector<256x128xf32>
    %c0_33 = arith.constant 0 : index
    %c0_34 = arith.constant 0 : index
    %c0_35 = arith.constant 0 : index
    %60 = vector.load %arg4[%c0_33, %c0_34, %c0_35] : memref<1x256x128xf32, #tpu.memory_space<vmem>>, vector<1x256x128xf32>
    %61 = vector.shape_cast %60 : vector<1x256x128xf32> to vector<256x128xf32>
    %62 = vector.shape_cast %59 : vector<256x128xf32> to vector<1x256x128xf32>
    tpu.vector_store %arg4[%c0_33, %c0_34, %c0_35], %62 {strides = array<i32>} : memref<1x256x128xf32, #tpu.memory_space<vmem>>, vector<1x256x128xf32>,
    return
  }
  func.func @transform_0(%arg0: i32) -> (i32, i32, i32, i32) {
    %c0_i32 = arith.constant 0 : i32
    %c0_i32_0 = arith.constant 0 : i32
    %c0_i32_1 = arith.constant 0 : i32
    %c0_i32_2 = arith.constant 0 : i32
    return %arg0, %c0_i32, %c0_i32_0, %c0_i32_1 : i32, i32, i32, i32
  }
  func.func @transform_1(%arg0: i32) -> (i32, i32, i32) {
    %c0_i32 = arith.constant 0 : i32
    %c0_i32_0 = arith.constant 0 : i32
    %c0_i32_1 = arith.constant 0 : i32
    %c0_i32_2 = arith.constant 0 : i32
    return %c0_i32, %c0_i32_0, %c0_i32_1 : i32, i32, i32
  }
  func.func @transform_2(%arg0: i32) -> (i32, i32) {
    %c0_i32 = arith.constant 0 : i32
    %c0_i32_0 = arith.constant 0 : i32
    %c0_i32_1 = arith.constant 0 : i32
    return %c0_i32, %c0_i32_0 : i32, i32
  }
  func.func @transform_3(%arg0: i32) -> (i32, i32, i32) {
    %c0_i32 = arith.constant 0 : i32
    %c0_i32_0 = arith.constant 0 : i32
    %c0_i32_1 = arith.constant 0 : i32
    return %arg0, %c0_i32, %c0_i32_0 : i32, i32, i32
  }
}

</mosaic_0001>

<bundles_post_ra>
// kernel: soft_split.1
= control target key start
LH: loop header
LB: loop body
LE: loop exit
PB: predicated region body
PF: predicated region fallthrough
CT: control target
= control target key end

     0   :  { %s4457_s12 = smov 0   ;;  %s5657_s0 = inlined_call_operand.vmem [shape: f32[2,18,18,4], index: 0, kind: input, shape index: {}]   ;;  %s5658_s1 = inlined_call_operand.vmem [shape: f32[9,4,128], index: 1, kind: input, shape index: {}]   ;;  %s5659_s2 = inlined_call_operand.vmem [shape: f32[1,128], index: 2, kind: input, shape index: {}]   ;;  %s5660_s3 = inlined_call_operand.vmem [shape: f32[2,256,128], index: 3, kind: output, shape index: {}]  }
   0x1 LB: > { %s3098_s13 = sadd.s32 4294967295, %s4435_s12   ;;  %p3102_p0 = scmp.ge.s32.totalorder %s4435_s12, 1  ;;  %s4435_s12 = sphi %s4457_s12, %s13_s12  }
   0x2   : > { %p137_p1 = scmp.lt.s32.totalorder %s4435_s12, 3 }
   0x4   : > { %p138_p2 = pnand %p3102_p0, %p137_p1 }
   0x6   : > { %141 = sbr.rel (%p138_p2) target bundleno = 527 (0x20f), region = 32 }
   0xd   : > { %v3106_v0 = vld [vmem:[%s5658_s1 + $0x4] sm:$0xf]  ;;  %vm422_vm0 = vcmask 1043456   ;;  %v4471_v1 = vld [vmem:[%s5658_s1 + $0x10] sm:$0xf]  ;;  %p161_p3 = scmp.lt.s32.totalorder %s3098_s13, 1 }
   0xe   : > { %3712 = vmatprep.subr.msk.mxu1 %vm422_vm0, %v3106_v0  ;;  %3912 = vmatprep.subr.msk.mxu0 %vm422_vm0, %v4471_v1  ;;  %v225_v2 = vld [vmem:[%s5658_s1] sm:$0xf]  ;;  %v3275_v3 = vld [vmem:[%s5658_s1 + $0x14] sm:$0xf]  ;;  %vm274_vm1 = vcmask 1046528   ;;  %vm357_vm2 = vcmask 31744  }
   0xf   : > { %3713 = vmatpush3.msk.msra.mxu1 %vm422_vm0, %v3106_v0  ;;  %3913 = vmatpush3.msk.msra.mxu0 %vm422_vm0, %v4471_v1  ;;  %s5836_s13 = smov (!%p161_p3, %s3098_s13), 1  ;;  %v4558_v33 = vld [vmem:[%s5658_s1 + $0x18] sm:$0xf]  ;;  %v4568_v35 = vld [vmem:[%s5658_s1 + $0x8] sm:$0xf]  ;;  %vm943_vm3 = vcmask 1045504  }
  0x10   : > { %3762 = vmatprep.subr.msk.mxu1 %vm422_vm0, %v225_v2  ;;  %3962 = vmatprep.subr.msk.mxu0 %vm422_vm0, %v3275_v3  ;;  %s4420_s22 = smul.u32 432, %s5836_s13  ;;  %s3414_s9 = sshll.u32 %s5836_s13, 8 }
  0x11   : > { %s5587_s16 = scalar_lea.vmem %s5660_s3, %s3414_s9 }
  0x12   : > { %s4493_s25 = scalar_lea.vmem %s5657_s0, %s4420_s22 }
  0x13   : > { %v4496_v4 = vld [vmem:[%s4493_s25] sm:$0xff]  ;;  %v4499_v5 = vld [vmem:[%s4493_s25 + $0x8] sm:$0xff]  ;;  %v4502_v6 = vld [vmem:[%s4493_s25 + $0x18] sm:$0xff] }
  0x14   : > { %5734 = vst [vmem:[#allocation2_spill] sm:$0xff] %v4502_v6  ;;  %v275_v7 = vrot.slane %v4496_v4, 1  ;;  %v276_v8 = vrot.slane %v4499_v5, 1  ;;  %v4507_v9 = vld [vmem:[%s4493_s25 + $0x20] sm:$0xff]  ;;  %v280_v10 = vrot.slane %v4502_v6, 1  ;;  %v4519_v15 = vld [vmem:[%s4493_s25 + $0x30] sm:$0xff] }
  0x15   : > { %5735 = vst [vmem:[#allocation3_spill] sm:$0xff] %v4507_v9  ;;  %v4511_v11 = vld [vmem:[%s4493_s25 + $0x10] sm:$0x3]  ;;  %v281_v12 = vrot.slane %v4507_v9, 1  ;;  %v4516_v14 = vld [vmem:[%s4493_s25 + $0x28] sm:$0x3] }
  0x16   : > { %v278_v13 = vrot.slane %v4511_v11, 1  ;;  %v277_v16 = vsel %vm274_vm1, %v275_v7, %v276_v8  ;;  %v283_v17 = vrot.slane %v4516_v14, 1  ;;  %v4524_v18 = vld [vmem:[%s4493_s25 + $0x38] sm:$0xff]  ;;  %v285_v19 = vrot.slane %v4519_v15, 1  ;;  %v4528_v20 = vld [vmem:[%s4493_s25 + $0x40] sm:$0x3] }
  0x17   : > { %3714 = vmatprep.mubr.msk.f32.mxu1 %vm357_vm2, %v277_v16  ;;  %v282_v21 = vsel %vm274_vm1, %v280_v10, %v281_v12  ;;  %v286_v23 = vrot.slane %v4524_v18, 1  ;;  %v288_v24 = vrot.slane %v4528_v20, 1  ;;  %v4536_v25 = vld [vmem:[%s4493_s25 + $0x48] sm:$0xff]  ;;  %v4539_v26 = vld [vmem:[%s4493_s25 + $0x50] sm:$0xff]  ;;  %v4542_v27 = vld [vmem:[%s4493_s25 + $0x58] sm:$0x3] }
  0x18   : > { %v279_v22 = vsel %vm274_vm1, %v276_v8, %v278_v13  ;;  %3914 = vmatprep.mubr.msk.f32.mxu0 %vm357_vm2, %v282_v21  ;;  %v284_v28 = vsel %vm274_vm1, %v281_v12, %v283_v17  ;;  %v290_v29 = vrot.slane %v4536_v25, 1  ;;  %v291_v30 = vrot.slane %v4539_v26, 1  ;;  %v4550_v31 = vld [vmem:[%s4493_s25 + $0x60] sm:$0xff]  ;;  %v4553_v32 = vld [vmem:[%s4493_s25 + $0x68] sm:$0xff]  ;;  %v4584_v41 = vld [vmem:[%s4493_s25 + $0x70] sm:$0x3] }
  0x19   : > { %3715 = vmatmul.mubr.msk.f32.vlgmr.msra.gmra.mrb[0].mxu1 %vm357_vm2, %v279_v22  ;;  %3915 = vmatmul.mubr.msk.f32.vlgmr.msra.gmra.mrb[0].mxu0 %vm357_vm2, %v284_v28  ;;  %v4563_v34 = vsel %vm274_vm1, %v285_v19, %v286_v23  ;;  %v4573_v36 = vsel %vm274_vm1, %v286_v23, %v288_v24  ;;  %v293_v37 = vrot.slane %v4542_v27, 1  ;;  %v295_v39 = vrot.slane %v4550_v31, 1  ;;  %v4590_v42 = vld [vmem:[%s4493_s25 + $0x78] sm:$0xff]  ;;  %v4593_v43 = vld [vmem:[%s4493_s25 + $0x80] sm:$0xff]  ;;  %v4613_v49 = vld [vmem:[%s4493_s25 + $0x88] sm:$0x3] }
  0x1a   : > { %3763 = vmatpush3.msk.msra.mxu1 %vm422_vm0, %v225_v2  ;;  %5736 = vst [vmem:[#allocation4_spill] sm:$0xff] %v4563_v34  ;;  %3963 = vmatpush3.msk.msra.mxu0 %vm422_vm0, %v3275_v3  ;;  %5737 = vst [vmem:[#allocation5_spill] sm:$0xff] %v4573_v36  ;;  %v4579_v38 = vsel %vm274_vm1, %v290_v29, %v291_v30  ;;  %v296_v40 = vrot.slane %v4553_v32, 1  ;;  %v298_v45 = vrot.slane %v4584_v41, 1  ;;  %v300_v47 = vrot.slane %v4590_v42, 1  ;;  %v4618_v50 = vld [vmem:[%s4493_s25 + $0x90] sm:$0xff] }
  0x1b   : > { %3717 = vmatprep.mubr.msk.f32.mxu1 %vm357_vm2, %v282_v21  ;;  %3917 = vmatprep.mubr.msk.f32.mxu0 %vm357_vm2, %v4563_v34  ;;  %5738 = vst [vmem:[#allocation6_spill] sm:$0xff] %v4579_v38  ;;  %v4604_v44 = vsel %vm274_vm1, %v291_v30, %v293_v37  ;;  %v301_v48 = vrot.slane %v4593_v43, 1  ;;  %v4621_v51 = vld [vmem:[%s4493_s25 + $0x98] sm:$0xff]  ;;  %v303_v53 = vrot.slane %v4613_v49, 1  ;;  %v305_v55 = vrot.slane %v4618_v50, 1  ;;  %v4644_v58 = vld [vmem:[%s4493_s25 + $0xa8] sm:$0xff] }
  0x1c   : > { %4012 = vmatprep.subr.msk.mxu0 %vm422_vm0, %v4558_v33  ;;  %3812 = vmatprep.subr.msk.mxu1 %vm422_vm0, %v4568_v35  ;;  %5739 = vst [vmem:[#allocation7_spill] sm:$0xff] %v4604_v44  ;;  %v4608_v46 = vsel %vm274_vm1, %v295_v39, %v296_v40  ;;  %v4630_v52 = vsel %vm274_vm1, %v296_v40, %v298_v45  ;;  %v306_v56 = vrot.slane %v4621_v51, 1  ;;  %v4639_v57 = vld [vmem:[%s4493_s25 + $0xa0] sm:$0x3]  ;;  %v4647_v59 = vld [vmem:[%s4493_s25 + $0xb0] sm:$0xff]  ;;  %v310_v63 = vrot.slane %v4644_v58, 1 }
  0x1d   : > { %3718 = vmatmul.mubr.msk.f32.gmra.mrb[2].mxu1 %vm357_vm2, %v284_v28  ;;  %3918 = vmatmul.mubr.msk.f32.gmra.mrb[2].mxu0 %vm357_vm2, %v4573_v36  ;;  %5740 = vst [vmem:[#allocation8_spill] sm:$0xff] %v4608_v46  ;;  %5741 = vst [vmem:[#allocation9_spill] sm:$0xff] %v4630_v52  ;;  %v4634_v54 = vsel %vm274_vm1, %v300_v47, %v301_v48  ;;  %v4656_v60 = vsel %vm274_vm1, %v301_v48, %v303_v53  ;;  %v308_v61 = vrot.slane %v4639_v57, 1  ;;  %v4665_v2 = vld [vmem:[%s4493_s25 + $0xb8] sm:$0x3]  ;;  %v4670_v3 = vld [vmem:[%s4493_s25 + $0xc0] sm:$0xff] }
  0x1e   : > { %3720 = vmatprep.mubr.msk.f32.mxu1 %vm357_vm2, %v4563_v34  ;;  %3920 = vmatprep.mubr.msk.f32.mxu0 %vm357_vm2, %v4579_v38  ;;  %5742 = vst [vmem:[#allocation10_spill] sm:$0xff] %v4634_v54  ;;  %5743 = vst [vmem:[#allocation11_spill] sm:$0xff] %v4656_v60  ;;  %v4660_v62 = vsel %vm274_vm1, %v305_v55, %v306_v56  ;;  %v311_v0 = vrot.slane %v4647_v59, 1  ;;  %v4673_v7 = vld [vmem:[%s4493_s25 + $0xc8] sm:$0xff]  ;;  %v313_v10 = vrot.slane %v4665_v2, 1  ;;  %v315_v13 = vrot.slane %v4670_v3, 1 }
  0x1f   : > { %5744 = vst [vmem:[#allocation12_spill] sm:$0xff] %v4660_v62  ;;  %v4682_v8 = vsel %vm274_vm1, %v306_v56, %v308_v61  ;;  %v316_v16 = vrot.slane %v4673_v7, 1  ;;  %v4691_v17 = vld [vmem:[%s4493_s25 + $0xd0] sm:$0x3]  ;;  %v949_v23 = vrot.slane %v4502_v6, 2  ;;  %v950_v24 = vrot.slane %v4507_v9, 2 }
  0x20   : > { %5745 = vst [vmem:[#allocation13_spill] sm:$0xff] %v4682_v8  ;;  %v4686_v12 = vsel %vm274_vm1, %v310_v63, %v311_v0  ;;  %v4702_v19 = vsel %vm274_vm1, %v311_v0, %v313_v10  ;;  %v318_v21 = vrot.slane %v4691_v17, 1  ;;  %v4711_v28 = vld [vmem:[%s4493_s25 + $0xd8] sm:$0xff]  ;;  %v4714_v29 = vld [vmem:[%s4493_s25 + $0xe0] sm:$0xff]  ;;  %v952_v30 = vrot.slane %v4516_v14, 2  ;;  %v4739_v53 = vld [vmem:[%s4493_s25 + $0xf0] sm:$0xff] }
  0x21   : > { %3721 = vmatmul.mubr.msk.f32.gmra.mrb[4].mxu1 %vm357_vm2, %v4573_v36  ;;  %3921 = vmatmul.mubr.msk.f32.gmra.mrb[4].mxu0 %vm357_vm2, %v4604_v44  ;;  %5746 = vst [vmem:[#allocation14_spill] sm:$0xff] %v4686_v12  ;;  %5747 = vst [vmem:[#allocation15_spill] sm:$0xff] %v4702_v19  ;;  %v4706_v22 = vsel %vm274_vm1, %v315_v13, %v316_v16  ;;  %v320_v39 = vrot.slane %v4711_v28, 1  ;;  %v321_v40 = vrot.slane %v4714_v29, 1  ;;  %v4731_v45 = vld [vmem:[%s4493_s25 + $0xe8] sm:$0x3] }
  0x22   : > { %3723 = vmatprep.mubr.msk.f32.mxu1 %vm357_vm2, %v4579_v38  ;;  %3923 = vmatprep.mubr.msk.f32.mxu0 %vm357_vm2, %v4608_v46  ;;  %5748 = vst [vmem:[#allocation16_spill] sm:$0xff] %v4706_v22  ;;  %v4726_v37 = vsel %vm274_vm1, %v316_v16, %v318_v21  ;;  %v4734_v47 = vsel %vm943_vm3, %v949_v23, %v950_v24  ;;  %v954_v48 = vrot.slane %v4519_v15, 2  ;;  %v955_v14 = vrot.slane %v4524_v18, 2  ;;  %v4742_v55 = vld [vmem:[%s4493_s25 + $0xf8] sm:$0xff]  ;;  %v4763_v16 = vld [vmem:[%s4493_s25 + $0x100] sm:$0x3] }
  0x23   : > { %5749 = vst [vmem:[#allocation17_spill] sm:$0xff] %v4726_v37  ;;  %v323_v56 = vrot.slane %v4731_v45, 1  ;;  %v957_v61 = vrot.slane %v4528_v20, 2  ;;  %v4755_v63 = vsel %vm943_vm3, %v950_v24, %v952_v30  ;;  %v4758_v0 = vsel %vm274_vm1, %v320_v39, %v321_v40  ;;  %v4774_v24 = vld [vmem:[%s4493_s25 + $0x110] sm:$0xff]  ;;  %v4781_v30 = vld [vmem:[%s5658_s1 + $0x1c] sm:$0xf] }
  0x24   : > { %5750 = vst [vmem:[#allocation18_spill] sm:$0xff] %v4758_v0  ;;  %v325_v10 = vrot.slane %v4739_v53, 1  ;;  %v326_v13 = vrot.slane %v4742_v55, 1  ;;  %v4766_v21 = vsel %vm943_vm3, %v954_v48, %v955_v14  ;;  %v959_v20 = vrot.slane %v4536_v25, 2  ;;  %v4877_v36 = vld [vmem:[%s4493_s25 + $0x148] sm:$0x3] }
  0x25   : > { %3724 = vmatmul.mubr.msk.f32.gmra.mrb[6].mxu1 %vm357_vm2, %v4604_v44  ;;  %3924 = vmatmul.mubr.msk.f32.gmra.mrb[6].mxu0 %vm357_vm2, %v4630_v52  ;;  %v960_v23 = vrot.slane %v4539_v26, 2  ;;  %v4788_v39 = vsel %vm274_vm1, %v321_v40, %v323_v56  ;;  %v4791_v48 = vsel %vm943_vm3, %v955_v14, %v957_v61  ;;  %v331_v40 = vrot.slane %v4774_v24, 1  ;;  %v4805_v56 = vld [vmem:[%s4493_s25 + $0x118] sm:$0x3] }
  0x26   : > { %3726 = vmatprep.mubr.msk.f32.mxu1 %vm357_vm2, %v4608_v46  ;;  %3926 = vmatprep.mubr.msk.f32.mxu0 %vm357_vm2, %v4634_v54  ;;  %5751 = vst [vmem:[#allocation19_spill] sm:$0xff] %v4788_v39  ;;  %5752 = vst [vmem:[#allocation20_spill] sm:$0xff] %v4791_v48  ;;  %v964_v61 = vrot.slane %v4550_v31, 2  ;;  %v4850_v46 = vld [vmem:[%s4493_s25 + $0x138] sm:$0xff]  ;;  %v972_v44 = vrot.slane %v4613_v49, 2  ;;  %v977_v34 = vrot.slane %v4639_v57, 2 }
  0x27   : > { %v4808_v14 = vsel %vm943_vm3, %v959_v20, %v960_v23  ;;  %v333_v20 = vrot.slane %v4805_v56, 1  ;;  %v340_v38 = vrot.slane %v4850_v46, 1  ;;  %v979_v57 = vrot.slane %v4644_v58, 2 }
  0x28   : > { %5754 = vst [vmem:[#allocation22_spill] sm:$0xff] %v4808_v14 }
  0x29   : > { %3727 = vmatmul.mubr.msk.f32.gmra.mrb[8].mxu1 %vm357_vm2, %v4630_v52  ;;  %3927 = vmatmul.mubr.msk.f32.gmra.mrb[8].mxu0 %vm357_vm2, %v4656_v60  ;;  %v4842_v52 = vld [vmem:[%s4493_s25 + $0x130] sm:$0x3] }
  0x2a   : > { %3729 = vmatprep.mubr.msk.f32.mxu1 %vm357_vm2, %v4634_v54  ;;  %3929 = vmatprep.mubr.msk.f32.mxu0 %vm357_vm2, %v4660_v62 }
  0x2d   : > { %3730 = vmatmul.mubr.msk.f32.gmra.mrb[10].mxu1 %vm357_vm2, %v4656_v60  ;;  %3930 = vmatmul.mubr.msk.f32.gmra.mrb[10].mxu0 %vm357_vm2, %v4682_v8 }
  0x2e   : > { %3732 = vmatprep.mubr.msk.f32.mxu1 %vm357_vm2, %v4660_v62  ;;  %3932 = vmatprep.mubr.msk.f32.mxu0 %vm357_vm2, %v4686_v12  ;;  %v967_v62 = vrot.slane %v4584_v41, 2  ;;  %v969_v41 = vrot.slane %v4590_v42, 2 }
  0x31   : > { %3733 = vmatmul.mubr.msk.f32.gmra.mrb[12].mxu1 %vm357_vm2, %v4682_v8  ;;  %3933 = vmatmul.mubr.msk.f32.gmra.mrb[12].mxu0 %vm357_vm2, %v4702_v19  ;;  %v4813_v8 = vld [vmem:[%s4493_s25 + $0x120] sm:$0xff] }
  0x32   : > { %3735 = vmatprep.mubr.msk.f32.mxu1 %vm357_vm2, %v4686_v12  ;;  %3935 = vmatprep.mubr.msk.f32.mxu0 %vm357_vm2, %v4706_v22  ;;  %v962_v12 = vrot.slane %v4542_v27, 2  ;;  %v335_v54 = vrot.slane %v4813_v8, 1 }
  0x34   : > { %v4834_v60 = vsel %vm943_vm3, %v960_v23, %v962_v12  ;;  %v4853_v12 = vld [vmem:[%s4493_s25 + $0x140] sm:$0xff] }
  0x35   : > { %3736 = vmatmul.mubr.msk.f32.gmra.mrb[14].mxu1 %vm357_vm2, %v4702_v19  ;;  %3936 = vmatmul.mubr.msk.f32.gmra.mrb[14].mxu0 %vm357_vm2, %v4726_v37  ;;  %v4799_v19 = vsel %vm274_vm1, %v325_v10, %v326_v13  ;;  %v4816_v10 = vld [vmem:[%s4493_s25 + $0x128] sm:$0xff]  ;;  %5756 = vst [vmem:[#allocation24_spill] sm:$0xff] %v4834_v60 }
  0x36   : > { %3738 = vmatprep.mubr.msk.f32.mxu1 %vm357_vm2, %v4706_v22  ;;  %3964 = vmatprep.mubr.msk.f32.mxu0 %vm357_vm2, %v4734_v47  ;;  %v4771_v22 = vld [vmem:[%s4493_s25 + $0x108] sm:$0xff]  ;;  %5753 = vst [vmem:[#allocation21_spill] sm:$0xff] %v4799_v19 }
  0x39   : > { %3739 = vmatmul.mubr.msk.f32.gmra.mrb[16].mxu1 %vm357_vm2, %v4726_v37  ;;  %3965 = vmatmul.mubr.msk.f32.vlgmr.msra.gmra.mrb[0].mxu0 %vm357_vm2, %v4755_v63  ;;  %v328_v37 = vrot.slane %v4763_v16, 1 }
  0x3a   : > { %3741 = vmatprep.mubr.msk.f32.mxu1 %vm357_vm2, %v4758_v0  ;;  %4013 = vmatpush3.msk.msra.mxu0 %vm422_vm0, %v4558_v33  ;;  %v330_v0 = vrot.slane %v4771_v22, 1  ;;  %v965_v33 = vrot.slane %v4553_v32, 2 }
  0x3b   : > { %3967 = vmatprep.mubr.msk.f32.mxu0 %vm357_vm2, %v4766_v21  ;;  %4062 = vmatprep.subr.msk.mxu0 %vm422_vm0, %v4781_v30  ;;  %v4827_v27 = vsel %vm274_vm1, %v326_v13, %v328_v37  ;;  %v970_v13 = vrot.slane %v4593_v43, 2 }
  0x3c   : > { %5755 = vst [vmem:[#allocation23_spill] sm:$0xff] %v4827_v27  ;;  %v4845_v37 = vsel %vm943_vm3, %v964_v61, %v965_v33  ;;  %v4865_v23 = vsel %vm943_vm3, %v965_v33, %v967_v62  ;;  %v338_v61 = vrot.slane %v4842_v52, 1  ;;  %v974_v62 = vrot.slane %v4618_v50, 2 }
  0x3d   : > { %3742 = vmatmul.mubr.msk.f32.gmra.mrb[18].mxu1 %vm357_vm2, %v4788_v39  ;;  %3968 = vmatmul.mubr.msk.f32.gmra.mrb[2].mxu0 %vm357_vm2, %v4791_v48  ;;  %v4837_v39 = vsel %vm274_vm1, %v330_v0, %v331_v40  ;;  %5758 = vst [vmem:[#allocation26_spill] sm:$0xff] %v4845_v37  ;;  %v4862_v0 = vsel %vm274_vm1, %v331_v40, %v333_v20  ;;  %5760 = vst [vmem:[#allocation28_spill] sm:$0xff] %v4865_v23  ;;  %v975_v33 = vrot.slane %v4621_v51, 2  ;;  %v4885_v20 = vld [vmem:[%s4493_s25 + $0x150] sm:$0xff]  ;;  %v4947_v48 = vld [vmem:[%s4493_s25 + $0x178] sm:$0x3] }
  0x3e   : > { %3744 = vmatprep.mubr.msk.f32.mxu1 %vm357_vm2, %v4799_v19  ;;  %3970 = vmatprep.mubr.msk.f32.mxu0 %vm357_vm2, %v4808_v14  ;;  %5757 = vst [vmem:[#allocation25_spill] sm:$0xff] %v4837_v39  ;;  %v336_v19 = vrot.slane %v4816_v10, 1  ;;  %5759 = vst [vmem:[#allocation27_spill] sm:$0xff] %v4862_v0  ;;  %v4880_v40 = vsel %vm943_vm3, %v969_v41, %v970_v13  ;;  %v343_v41 = vrot.slane %v4877_v36, 1 }
  0x3f   : > { %5762 = vst [vmem:[#allocation30_spill] sm:$0xff] %v4880_v40 }
  0x40   : > { %v4897_v49 = vsel %vm274_vm1, %v336_v19, %v338_v61  ;;  %v980_v61 = vrot.slane %v4647_v59, 2 }
  0x41   : > { %3745 = vmatmul.mubr.msk.f32.gmra.mrb[20].mxu1 %vm357_vm2, %v4827_v27  ;;  %3971 = vmatmul.mubr.msk.f32.gmra.mrb[4].mxu0 %vm357_vm2, %v4834_v60  ;;  %v4871_v27 = vsel %vm274_vm1, %v335_v54, %v336_v19  ;;  %v4888_v54 = vld [vmem:[%s4493_s25 + $0x158] sm:$0xff]  ;;  %5763 = vst [vmem:[#allocation31_spill] sm:$0xff] %v4897_v49  ;;  %v4912_v60 = vld [vmem:[%s4493_s25 + $0x160] sm:$0x3]  ;;  %v4915_v19 = vsel %vm943_vm3, %v974_v62, %v975_v33 }
  0x42   : > { %3747 = vmatprep.mubr.msk.f32.mxu1 %vm357_vm2, %v4837_v39  ;;  %3973 = vmatprep.mubr.msk.f32.mxu0 %vm357_vm2, %v4845_v37  ;;  %5761 = vst [vmem:[#allocation29_spill] sm:$0xff] %v4871_v27  ;;  %v341_v39 = vrot.slane %v4853_v12, 1  ;;  %v4904_v37 = vsel %vm943_vm3, %v970_v13, %v972_v44  ;;  %v4923_v44 = vld [vmem:[%s4493_s25 + $0x170] sm:$0xff]  ;;  %v4935_v13 = vsel %vm943_vm3, %v975_v33, %v977_v34  ;;  %v348_v62 = vrot.slane %v4912_v60, 1 }
  0x43   : > { %5764 = vst [vmem:[#allocation32_spill] sm:$0xff] %v4904_v37  ;;  %5766 = vst [vmem:[#allocation34_spill] sm:$0xff] %v4923_v44  ;;  %v984_v34 = vrot.slane %v4670_v3, 2  ;;  %v985_v33 = vrot.slane %v4673_v7, 2 }
  0x44   : > { %5768 = vst [vmem:[#allocation36_spill] sm:$0xff] %v4935_v13 }
  0x45   : > { %3748 = vmatmul.mubr.msk.f32.gmra.mrb[22].mxu1 %vm357_vm2, %v4862_v0  ;;  %3974 = vmatmul.mubr.msk.f32.gmra.mrb[6].mxu0 %vm357_vm2, %v4865_v23  ;;  %v4907_v0 = vsel %vm274_vm1, %v340_v38, %v341_v39  ;;  %v345_v23 = vrot.slane %v4885_v20, 1  ;;  %v4932_v38 = vsel %vm274_vm1, %v341_v39, %v343_v41  ;;  %v4950_v39 = vsel %vm943_vm3, %v979_v57, %v980_v61 }
  0x46   : > { %3750 = vmatprep.mubr.msk.f32.mxu1 %vm357_vm2, %v4871_v27  ;;  %3976 = vmatprep.mubr.msk.f32.mxu0 %vm357_vm2, %v4880_v40  ;;  %5765 = vst [vmem:[#allocation33_spill] sm:$0xff] %v4907_v0  ;;  %v346_v27 = vrot.slane %v4888_v54, 1  ;;  %v4920_v40 = vld [vmem:[%s4493_s25 + $0x168] sm:$0xff]  ;;  %5767 = vst [vmem:[#allocation35_spill] sm:$0xff] %v4932_v38 }
  0x48   : > { %v4941_v14 = vsel %vm274_vm1, %v345_v23, %v346_v27  ;;  %v353_v23 = vrot.slane %v4947_v48, 1 }
  0x49   : > { %3751 = vmatmul.mubr.msk.f32.gmra.mrb[24].mxu1 %vm357_vm2, %v4897_v49  ;;  %3977 = vmatmul.mubr.msk.f32.gmra.mrb[8].mxu0 %vm357_vm2, %v4904_v37  ;;  %5769 = vst [vmem:[#allocation37_spill] sm:$0xff] %v4941_v14  ;;  %v982_v49 = vrot.slane %v4665_v2, 2  ;;  %v350_v37 = vrot.slane %v4920_v40, 1  ;;  %v4961_v2 = vsel %vm274_vm1, %v346_v27, %v348_v62  ;;  %v990_v27 = vrot.slane %v4714_v29, 2 }
  0x4a   : > { %3753 = vmatprep.mubr.msk.f32.mxu1 %vm357_vm2, %v4907_v0  ;;  %3979 = vmatprep.mubr.msk.f32.mxu0 %vm357_vm2, %v4915_v19  ;;  %v351_v0 = vrot.slane %v4923_v44, 1  ;;  %5770 = vst [vmem:[#allocation38_spill] sm:$0xff] %v4961_v2  ;;  %v994_v62 = vrot.slane %v4739_v53, 2 }
  0x4b   : > { %v4967_v41 = vsel %vm943_vm3, %v980_v61, %v982_v49  ;;  %v992_v49 = vrot.slane %v4731_v45, 2 }
  0x4c   : > { %v4970_v57 = vsel %vm274_vm1, %v350_v37, %v351_v0  ;;  %v4985_v37 = vsel %vm274_vm1, %v351_v0, %v353_v23  ;;  %v5020_v23 = vld [vmem:[%s5658_s1 + $0xc] sm:$0xf] }
  0x4d   : > { %3754 = vmatmul.mubr.msk.f32.gmra.mrb[26].mxu1 %vm357_vm2, %v4932_v38  ;;  %3980 = vmatmul.mubr.msk.f32.gmra.mrb[10].mxu0 %vm357_vm2, %v4935_v13  ;;  %5771 = vst [vmem:[#allocation39_spill] sm:$0xff] %v4970_v57  ;;  %v987_v38 = vrot.slane %v4691_v17, 2  ;;  %v4974_v13 = vsel %vm943_vm3, %v984_v34, %v985_v33  ;;  %5772 = vst [vmem:[#allocation40_spill] sm:$0xff] %v4985_v37  ;;  %v995_v34 = vrot.slane %v4742_v55, 2 }
  0x4e   : > { %3756 = vmatprep.mubr.msk.f32.mxu1 %vm357_vm2, %v4941_v14  ;;  %3982 = vmatprep.mubr.msk.f32.mxu0 %vm357_vm2, %v4950_v39  ;;  %v989_v14 = vrot.slane %v4711_v28, 2  ;;  %v5007_v45 = vsel %vm943_vm3, %v990_v27, %v992_v49 }
  0x4f   : > { %v4990_v17 = vsel %vm943_vm3, %v985_v33, %v987_v38  ;;  %v5011_v0 = vsel %vm943_vm3, %v994_v62, %v995_v34  ;;  %v999_v38 = vrot.slane %v4771_v22, 2  ;;  %v1000_v33 = vrot.slane %v4774_v24, 2 }
  0x50   : > { %v4994_v61 = vsel %vm943_vm3, %v989_v14, %v990_v27  ;;  %v997_v14 = vrot.slane %v4763_v16, 2  ;;  %v1002_v27 = vrot.slane %v4805_v56, 2  ;;  %v1004_v62 = vrot.slane %v4813_v8, 2 }
  0x51   : > { %3757 = vmatmul.mubr.msk.f32.gmra.mrb[28].mxu1 %vm357_vm2, %v4961_v2  ;;  %3983 = vmatmul.mubr.msk.f32.gmra.mrb[12].mxu0 %vm357_vm2, %v4967_v41  ;;  %v5035_v49 = vsel %vm943_vm3, %v999_v38, %v1000_v33  ;;  %v1009_v38 = vrot.slane %v4850_v46, 2  ;;  %v1020_v2 = vrot.slane %v4923_v44, 2 }
  0x52   : > { %3759 = vmatprep.mubr.msk.f32.mxu1 %vm357_vm2, %v4970_v57  ;;  %3985 = vmatprep.mubr.msk.f32.mxu0 %vm357_vm2, %v4974_v13  ;;  %v5031_v16 = vsel %vm943_vm3, %v995_v34, %v997_v14  ;;  %5773 = vst [vmem:[#allocation41_spill] sm:$0xff] %v5035_v49  ;;  %v5050_v56 = vsel %vm943_vm3, %v1000_v33, %v1002_v27  ;;  %v1007_v34 = vrot.slane %v4842_v52, 2  ;;  %v1012_v33 = vrot.slane %v4877_v36, 2 }
  0x53   : > { %v1015_v57 = vrot.slane %v4888_v54, 2 }
  0x55   : > { %3760 = vmatmul.mubr.msk.f32.gmra.mrb[30].mxu1 %vm357_vm2, %v4985_v37  ;;  %3986 = vmatmul.mubr.msk.f32.gmra.mrb[14].mxu0 %vm357_vm2, %v4990_v17  ;;  %v1010_v37 = vrot.slane %v4853_v12, 2 }
  0x56   : > { %3764 = vmatprep.mubr.msk.f32.mxu1 %vm357_vm2, %v4496_v4  ;;  %3988 = vmatprep.mubr.msk.f32.mxu0 %vm357_vm2, %v4994_v61 }
  0x57   : > { %v5071_v27 = vsel %vm943_vm3, %v1009_v38, %v1010_v37  ;;  %v5084_v36 = vsel %vm943_vm3, %v1010_v37, %v1012_v33  ;;  %v1019_v38 = vrot.slane %v4920_v40, 2  ;;  %v1022_v37 = vrot.slane %v4947_v48, 2 }
  0x58   : > { %5775 = vst [vmem:[#allocation43_spill] sm:$0xff] %v5071_v27  ;;  %5776 = vst [vmem:[#allocation44_spill] sm:$0xff] %v5084_v36 }
  0x59   : > { %3765 = vmatmul.mubr.msk.f32.vlgmr.msra.gmra.mrb[0].mxu1 %vm357_vm2, %v4499_v5  ;;  %3989 = vmatmul.mubr.msk.f32.gmra.mrb[16].mxu0 %vm357_vm2, %v5007_v45  ;;  %v5111_v33 = vsel %vm943_vm3, %v1019_v38, %v1020_v2  ;;  %v5127_v48 = vsel %vm943_vm3, %v1020_v2, %v1022_v37  ;;  %v945_v38 = vrot.slane %v4499_v5, 2  ;;  %v947_v37 = vrot.slane %v4511_v11, 2  ;;  %v5783_v5 = vld [vmem:[#allocation20_spill] sm:$0xff]  ;;  %v5784_v11 = vld [vmem:[#allocation22_spill] sm:$0xff] }
  0x5a   : > { %3813 = vmatpush3.msk.msra.mxu1 %vm422_vm0, %v4568_v35  ;;  %3767 = vmatprep.mubr.msk.f32.mxu1 %vm357_vm2, %v4502_v6  ;;  %v1005_v35 = vrot.slane %v4816_v10, 2  ;;  %v5098_v6 = vld [vmem:[%s4493_s25 + $0x188] sm:$0xff]  ;;  %5779 = vst [vmem:[#allocation47_spill] sm:$0xff] %v5111_v33  ;;  %5780 = vst [vmem:[#allocation48_spill] sm:$0xff] %v5127_v48 }
  0x5b   : > { %3991 = vmatprep.mubr.msk.f32.mxu0 %vm357_vm2, %v5011_v0  ;;  %3862 = vmatprep.subr.msk.mxu1 %vm422_vm0, %v5020_v23 }
  0x5c   : > { %v5054_v14 = vsel %vm943_vm3, %v1004_v62, %v1005_v35  ;;  %v5067_v52 = vsel %vm943_vm3, %v1005_v35, %v1007_v34  ;;  %v1014_v62 = vrot.slane %v4885_v20, 2  ;;  %v1017_v35 = vrot.slane %v4912_v60, 2 }
  0x5d   : > { %3768 = vmatmul.mubr.msk.f32.gmra.mrb[2].mxu1 %vm357_vm2, %v4507_v9  ;;  %3992 = vmatmul.mubr.msk.f32.gmra.mrb[18].mxu0 %vm357_vm2, %v5031_v16  ;;  %5774 = vst [vmem:[#allocation42_spill] sm:$0xff] %v5067_v52  ;;  %v5095_v9 = vld [vmem:[%s4493_s25 + $0x180] sm:$0xff] }
  0x5e   : > { %3770 = vmatprep.mubr.msk.f32.mxu1 %vm357_vm2, %v4519_v15  ;;  %3994 = vmatprep.mubr.msk.f32.mxu0 %vm357_vm2, %v5035_v49  ;;  %v5088_v34 = vsel %vm943_vm3, %v1014_v62, %v1015_v57  ;;  %v5107_v60 = vsel %vm943_vm3, %v1015_v57, %v1017_v35  ;;  %v1890_v62 = vrot.slane %v5095_v9, 2 }
  0x5f   : > { %5777 = vst [vmem:[#allocation45_spill] sm:$0xff] %v5088_v34  ;;  %5778 = vst [vmem:[#allocation46_spill] sm:$0xff] %v5107_v60 }
  0x61   : > { %3771 = vmatmul.mubr.msk.f32.gmra.mrb[4].mxu1 %vm357_vm2, %v4524_v18  ;;  %3995 = vmatmul.mubr.msk.f32.gmra.mrb[20].mxu0 %vm357_vm2, %v5050_v56 }
  0x62   : > { %3773 = vmatprep.mubr.msk.f32.mxu1 %vm357_vm2, %v4536_v25  ;;  %3997 = vmatprep.mubr.msk.f32.mxu0 %vm357_vm2, %v5054_v14 }
  0x65   : > { %3774 = vmatmul.mubr.msk.f32.gmra.mrb[6].mxu1 %vm357_vm2, %v4539_v26  ;;  %3998 = vmatmul.mubr.msk.f32.gmra.mrb[22].mxu0 %vm357_vm2, %v5067_v52  ;;  %v5116_v52 = vld [vmem:[%s4493_s25 + $0x190] sm:$0x3] }
  0x66   : > { %3776 = vmatprep.mubr.msk.f32.mxu1 %vm357_vm2, %v4550_v31  ;;  %4000 = vmatprep.mubr.msk.f32.mxu0 %vm357_vm2, %v5071_v27  ;;  %v1891_v27 = vrot.slane %v5098_v6, 2  ;;  %v1893_v57 = vrot.slane %v5116_v52, 2 }
  0x68   : > { %v5131_v35 = vsel %vm943_vm3, %v1890_v62, %v1891_v27  ;;  %v5142_v2 = vsel %vm943_vm3, %v1891_v27, %v1893_v57  ;;  %v5157_v27 = vld [vmem:[%s5658_s1 + $0x20] sm:$0xf] }
  0x69   : > { %3777 = vmatmul.mubr.msk.f32.gmra.mrb[8].mxu1 %vm357_vm2, %v4553_v32  ;;  %4001 = vmatmul.mubr.msk.f32.gmra.mrb[24].mxu0 %vm357_vm2, %v5084_v36  ;;  %5781 = vst [vmem:[#allocation49_spill] sm:$0xff] %v5131_v35  ;;  %5782 = vst [vmem:[#allocation50_spill] sm:$0xff] %v5142_v2  ;;  %v5788_v57 = vld [vmem:[#allocation30_spill] sm:$0xff] }
  0x6a   : > { %3779 = vmatprep.mubr.msk.f32.mxu1 %vm357_vm2, %v4590_v42  ;;  %4003 = vmatprep.mubr.msk.f32.mxu0 %vm357_vm2, %v5088_v34 }
  0x6d   : > { %3780 = vmatmul.mubr.msk.f32.gmra.mrb[10].mxu1 %vm357_vm2, %v4593_v43  ;;  %4004 = vmatmul.mubr.msk.f32.gmra.mrb[26].mxu0 %vm357_vm2, %v5107_v60 }
  0x6e   : > { %3782 = vmatprep.mubr.msk.f32.mxu1 %vm357_vm2, %v4618_v50  ;;  %4006 = vmatprep.mubr.msk.f32.mxu0 %vm357_vm2, %v5111_v33 }
  0x71   : > { %3783 = vmatmul.mubr.msk.f32.gmra.mrb[12].mxu1 %vm357_vm2, %v4621_v51  ;;  %4007 = vmatmul.mubr.msk.f32.gmra.mrb[28].mxu0 %vm357_vm2, %v5127_v48 }
  0x72   : > { %3785 = vmatprep.mubr.msk.f32.mxu1 %vm357_vm2, %v4644_v58  ;;  %4009 = vmatprep.mubr.msk.f32.mxu0 %vm357_vm2, %v5131_v35  ;;  %v5793_v35 = vld [vmem:[#allocation6_spill] sm:$0xff] }
  0x75   : > { %3786 = vmatmul.mubr.msk.f32.gmra.mrb[14].mxu1 %vm357_vm2, %v4647_v59  ;;  %4010 = vmatmul.mubr.msk.f32.gmra.mrb[30].mxu0 %vm357_vm2, %v5142_v2  ;;  %v5792_v2 = vld [vmem:[#allocation5_spill] sm:$0xff] }
  0x76   : > { %3788 = vmatprep.mubr.msk.f32.mxu1 %vm357_vm2, %v4670_v3  ;;  %4014 = vmatprep.mubr.msk.f32.mxu0 %vm357_vm2, %v4519_v15 }
  0x79   : > { %3789 = vmatmul.mubr.msk.f32.gmra.mrb[16].mxu1 %vm357_vm2, %v4673_v7  ;;  %4015 = vmatmul.mubr.msk.f32.vlgmr.msra.gmra.mrb[0].mxu0 %vm357_vm2, %v4524_v18 }
  0x7a   : > { %3791 = vmatprep.mubr.msk.f32.mxu1 %vm357_vm2, %v4711_v28  ;;  %4063 = vmatpush3.msk.msra.mxu0 %vm422_vm0, %v4781_v30  ;;  %v944_v30 = vrot.slane %v4496_v4, 2  ;;  %v948_v4 = vsel %vm943_vm3, %v945_v38, %v947_v37  ;;  %v5790_v37 = vld [vmem:[#allocation36_spill] sm:$0xff] }
  0x7b   : > { %4017 = vmatprep.mubr.msk.f32.mxu0 %vm357_vm2, %v4536_v25  ;;  %4112 = vmatprep.subr.msk.mxu0 %vm422_vm0, %v5157_v27 }
  0x7c   : > { %v946_v62 = vsel %vm943_vm3, %v944_v30, %v945_v38  ;;  %v5789_v30 = vld [vmem:[#allocation32_spill] sm:$0xff]  ;;  %v5281_v38 = vld [vmem:[%s4493_s25 + $0x198] sm:$0xff] }
  0x7d   : > { %3792 = vmatmul.mubr.msk.f32.gmra.mrb[18].mxu1 %vm357_vm2, %v4714_v29  ;;  %4018 = vmatmul.mubr.msk.f32.gmra.mrb[2].mxu0 %vm357_vm2, %v4539_v26 }
  0x7e   : > { %3794 = vmatprep.mubr.msk.f32.mxu1 %vm357_vm2, %v4739_v53  ;;  %4020 = vmatprep.mubr.msk.f32.mxu0 %vm357_vm2, %v4550_v31 }
  0x81   : > { %3795 = vmatmul.mubr.msk.f32.gmra.mrb[20].mxu1 %vm357_vm2, %v4742_v55  ;;  %4021 = vmatmul.mubr.msk.f32.gmra.mrb[4].mxu0 %vm357_vm2, %v4553_v32 }
  0x82   : > { %3797 = vmatprep.mubr.msk.f32.mxu1 %vm357_vm2, %v4771_v22  ;;  %4023 = vmatprep.mubr.msk.f32.mxu0 %vm357_vm2, %v4590_v42 }
  0x85   : > { %3798 = vmatmul.mubr.msk.f32.gmra.mrb[22].mxu1 %vm357_vm2, %v4774_v24  ;;  %4024 = vmatmul.mubr.msk.f32.gmra.mrb[6].mxu0 %vm357_vm2, %v4593_v43 }
  0x86   : > { %3800 = vmatprep.mubr.msk.f32.mxu1 %vm357_vm2, %v4813_v8  ;;  %4026 = vmatprep.mubr.msk.f32.mxu0 %vm357_vm2, %v4618_v50 }
  0x89   : > { %3801 = vmatmul.mubr.msk.f32.gmra.mrb[24].mxu1 %vm357_vm2, %v4816_v10  ;;  %4027 = vmatmul.mubr.msk.f32.gmra.mrb[8].mxu0 %vm357_vm2, %v4621_v51 }
  0x8a   : > { %3803 = vmatprep.mubr.msk.f32.mxu1 %vm357_vm2, %v4850_v46  ;;  %4029 = vmatprep.mubr.msk.f32.mxu0 %vm357_vm2, %v4644_v58 }
  0x8d   : > { %3804 = vmatmul.mubr.msk.f32.gmra.mrb[26].mxu1 %vm357_vm2, %v4853_v12  ;;  %4030 = vmatmul.mubr.msk.f32.gmra.mrb[10].mxu0 %vm357_vm2, %v4647_v59 }
  0x8e   : > { %3806 = vmatprep.mubr.msk.f32.mxu1 %vm357_vm2, %v4885_v20  ;;  %4032 = vmatprep.mubr.msk.f32.mxu0 %vm357_vm2, %v4670_v3 }
  0x91   : > { %3807 = vmatmul.mubr.msk.f32.gmra.mrb[28].mxu1 %vm357_vm2, %v4888_v54  ;;  %4033 = vmatmul.mubr.msk.f32.gmra.mrb[12].mxu0 %vm357_vm2, %v4673_v7 }
  0x92   : > { %3809 = vmatprep.mubr.msk.f32.mxu1 %vm357_vm2, %v4920_v40  ;;  %4035 = vmatprep.mubr.msk.f32.mxu0 %vm357_vm2, %v4711_v28 }
  0x95   : > { %3810 = vmatmul.mubr.msk.f32.gmra.mrb[30].mxu1 %vm357_vm2, %v4923_v44  ;;  %4036 = vmatmul.mubr.msk.f32.gmra.mrb[14].mxu0 %vm357_vm2, %v4714_v29 }
  0x96   : > { %3814 = vmatprep.mubr.msk.f32.mxu1 %vm357_vm2, %v946_v62  ;;  %4038 = vmatprep.mubr.msk.f32.mxu0 %vm357_vm2, %v4739_v53  ;;  %v5292_v62 = vld [vmem:[%s4493_s25 + $0x1a0] sm:$0xff] }
  0x99   : > { %3815 = vmatmul.mubr.msk.f32.vlgmr.msra.gmra.mrb[0].mxu1 %vm357_vm2, %v948_v4  ;;  %4039 = vmatmul.mubr.msk.f32.gmra.mrb[16].mxu0 %vm357_vm2, %v4742_v55  ;;  %v5791_v4 = vld [vmem:[#allocation4_spill] sm:$0xff] }
  0x9a   : > { %3863 = vmatpush3.msk.msra.mxu1 %vm422_vm0, %v5020_v23  ;;  %3817 = vmatprep.mubr.msk.f32.mxu1 %vm357_vm2, %v4734_v47  ;;  %v5785_v47 = vld [vmem:[#allocation24_spill] sm:$0xff] }
  0x9b   : > { %4041 = vmatprep.mubr.msk.f32.mxu0 %vm357_vm2, %v4771_v22  ;;  %4162 = vmatprep.subr.msk.mxu1 %vm422_vm0, %v4471_v1  ;;  %v5787_v23 = vld [vmem:[#allocation28_spill] sm:$0xff] }
  0x9d   : > { %3818 = vmatmul.mubr.msk.f32.gmra.mrb[2].mxu1 %vm357_vm2, %v4755_v63  ;;  %4042 = vmatmul.mubr.msk.f32.gmra.mrb[18].mxu0 %vm357_vm2, %v4774_v24  ;;  %v5786_v63 = vld [vmem:[#allocation26_spill] sm:$0xff] }
  0x9e   : > { %3820 = vmatprep.mubr.msk.f32.mxu1 %vm357_vm2, %v4766_v21  ;;  %4044 = vmatprep.mubr.msk.f32.mxu0 %vm357_vm2, %v4813_v8 }
  0xa1   : > { %3821 = vmatmul.mubr.msk.f32.gmra.mrb[4].mxu1 %vm357_vm2, %v5783_v5  ;;  %4045 = vmatmul.mubr.msk.f32.gmra.mrb[20].mxu0 %vm357_vm2, %v4816_v10 }
  0xa2   : > { %3823 = vmatprep.mubr.msk.f32.mxu1 %vm357_vm2, %v5784_v11  ;;  %4047 = vmatprep.mubr.msk.f32.mxu0 %vm357_vm2, %v4850_v46 }
  0xa5   : > { %3824 = vmatmul.mubr.msk.f32.gmra.mrb[6].mxu1 %vm357_vm2, %v5785_v47  ;;  %4048 = vmatmul.mubr.msk.f32.gmra.mrb[22].mxu0 %vm357_vm2, %v4853_v12 }
  0xa6   : > { %3826 = vmatprep.mubr.msk.f32.mxu1 %vm357_vm2, %v5786_v63  ;;  %4050 = vmatprep.mubr.msk.f32.mxu0 %vm357_vm2, %v4885_v20 }
  0xa9   : > { %3827 = vmatmul.mubr.msk.f32.gmra.mrb[8].mxu1 %vm357_vm2, %v5787_v23  ;;  %4051 = vmatmul.mubr.msk.f32.gmra.mrb[24].mxu0 %vm357_vm2, %v4888_v54 }
  0xaa   : > { %3829 = vmatprep.mubr.msk.f32.mxu1 %vm357_vm2, %v5788_v57  ;;  %4053 = vmatprep.mubr.msk.f32.mxu0 %vm357_vm2, %v4920_v40 }
  0xad   : > { %3830 = vmatmul.mubr.msk.f32.gmra.mrb[10].mxu1 %vm357_vm2, %v5789_v30  ;;  %4054 = vmatmul.mubr.msk.f32.gmra.mrb[26].mxu0 %vm357_vm2, %v4923_v44  ;;  %v5794_v44 = vld [vmem:[#allocation7_spill] sm:$0xff] }
  0xae   : > { %3832 = vmatprep.mubr.msk.f32.mxu1 %vm357_vm2, %v4915_v19  ;;  %4056 = vmatprep.mubr.msk.f32.mxu0 %vm357_vm2, %v5095_v9 }
  0xb1   : > { %3833 = vmatmul.mubr.msk.f32.gmra.mrb[12].mxu1 %vm357_vm2, %v5790_v37  ;;  %4057 = vmatmul.mubr.msk.f32.gmra.mrb[28].mxu0 %vm357_vm2, %v5098_v6 }
  0xb2   : > { %3835 = vmatprep.mubr.msk.f32.mxu1 %vm357_vm2, %v4950_v39  ;;  %4059 = vmatprep.mubr.msk.f32.mxu0 %vm357_vm2, %v5281_v38 }
  0xb5   : > { %3836 = vmatmul.mubr.msk.f32.gmra.mrb[14].mxu1 %vm357_vm2, %v4967_v41  ;;  %4060 = vmatmul.mubr.msk.f32.gmra.mrb[30].mxu0 %vm357_vm2, %v5292_v62 }
  0xb6   : > { %3838 = vmatprep.mubr.msk.f32.mxu1 %vm357_vm2, %v4974_v13  ;;  %4064 = vmatprep.mubr.msk.f32.mxu0 %vm357_vm2, %v5791_v4  ;;  %v5795_v4 = vld [vmem:[#allocation8_spill] sm:$0xff] }
  0xb9   : > { %3839 = vmatmul.mubr.msk.f32.gmra.mrb[16].mxu1 %vm357_vm2, %v4990_v17  ;;  %4065 = vmatmul.mubr.msk.f32.vlgmr.msra.gmra.mrb[0].mxu0 %vm357_vm2, %v5792_v2  ;;  %v5796_v2 = vld [vmem:[#allocation9_spill] sm:$0xff] }
  0xba   : > { %3841 = vmatprep.mubr.msk.f32.mxu1 %vm357_vm2, %v4994_v61  ;;  %4113 = vmatpush3.msk.msra.mxu0 %vm422_vm0, %v5157_v27  ;;  %v5799_v27 = vld [vmem:[#allocation12_spill] sm:$0xff] }
  0xbb   : > { %4067 = vmatprep.mubr.msk.f32.mxu0 %vm357_vm2, %v5793_v35  ;;  %v5797_v35 = vld [vmem:[#allocation10_spill] sm:$0xff] }
  0xbd   : > { %3842 = vmatmul.mubr.msk.f32.gmra.mrb[18].mxu1 %vm357_vm2, %v5007_v45  ;;  %4068 = vmatmul.mubr.msk.f32.gmra.mrb[2].mxu0 %vm357_vm2, %v5794_v44  ;;  %v5798_v44 = vld [vmem:[#allocation11_spill] sm:$0xff] }
  0xbe   : > { %3844 = vmatprep.mubr.msk.f32.mxu1 %vm357_vm2, %v5011_v0  ;;  %4070 = vmatprep.mubr.msk.f32.mxu0 %vm357_vm2, %v5795_v4  ;;  %v5800_v4 = vld [vmem:[#allocation42_spill] sm:$0xff] }
  0xc1   : > { %3845 = vmatmul.mubr.msk.f32.gmra.mrb[20].mxu1 %vm357_vm2, %v5031_v16  ;;  %4071 = vmatmul.mubr.msk.f32.gmra.mrb[4].mxu0 %vm357_vm2, %v5796_v2  ;;  %v5801_v2 = vld [vmem:[#allocation13_spill] sm:$0xff] }
  0xc2   : > { %3847 = vmatprep.mubr.msk.f32.mxu1 %vm357_vm2, %v5035_v49  ;;  %4073 = vmatprep.mubr.msk.f32.mxu0 %vm357_vm2, %v5797_v35  ;;  %v5802_v49 = vld [vmem:[#allocation43_spill] sm:$0xff]  ;;  %v5803_v35 = vld [vmem:[#allocation14_spill] sm:$0xff] }
  0xc5   : > { %3848 = vmatmul.mubr.msk.f32.gmra.mrb[22].mxu1 %vm357_vm2, %v5050_v56  ;;  %4074 = vmatmul.mubr.msk.f32.gmra.mrb[6].mxu0 %vm357_vm2, %v5798_v44  ;;  %v5804_v44 = vld [vmem:[#allocation15_spill] sm:$0xff] }
  0xc6   : > { %3850 = vmatprep.mubr.msk.f32.mxu1 %vm357_vm2, %v5054_v14  ;;  %4076 = vmatprep.mubr.msk.f32.mxu0 %vm357_vm2, %v5799_v27  ;;  %v5805_v27 = vld [vmem:[#allocation16_spill] sm:$0xff] }
  0xc9   : > { %3851 = vmatmul.mubr.msk.f32.gmra.mrb[24].mxu1 %vm357_vm2, %v5800_v4  ;;  %4077 = vmatmul.mubr.msk.f32.gmra.mrb[8].mxu0 %vm357_vm2, %v5801_v2  ;;  %v5806_v2 = vld [vmem:[#allocation17_spill] sm:$0xff] }
  0xca   : > { %3853 = vmatprep.mubr.msk.f32.mxu1 %vm357_vm2, %v5802_v49  ;;  %4079 = vmatprep.mubr.msk.f32.mxu0 %vm357_vm2, %v5803_v35  ;;  %v5807_v35 = vld [vmem:[#allocation18_spill] sm:$0xff] }
  0xcd   : > { %3854 = vmatmul.mubr.msk.f32.gmra.mrb[26].mxu1 %vm357_vm2, %v5084_v36  ;;  %4080 = vmatmul.mubr.msk.f32.gmra.mrb[10].mxu0 %vm357_vm2, %v5804_v44  ;;  %v5808_v44 = vld [vmem:[#allocation19_spill] sm:$0xff] }
  0xce   : > { %3856 = vmatprep.mubr.msk.f32.mxu1 %vm357_vm2, %v5088_v34  ;;  %4082 = vmatprep.mubr.msk.f32.mxu0 %vm357_vm2, %v5805_v27  ;;  %v5809_v34 = vld [vmem:[#allocation2_spill] sm:$0xff]  ;;  %v5810_v27 = vld [vmem:[#allocation21_spill] sm:$0xff]  ;;  %v5419_v36 = vld [vmem:[%s4493_s25 + $0x1a8] sm:$0x3] }
  0xd1   : > { %3857 = vmatmul.mubr.msk.f32.gmra.mrb[28].mxu1 %vm357_vm2, %v5107_v60  ;;  %4083 = vmatmul.mubr.msk.f32.gmra.mrb[12].mxu0 %vm357_vm2, %v5806_v2  ;;  %v5811_v60 = vld [vmem:[#allocation3_spill] sm:$0xff] }
  0xd2   : > { %3859 = vmatprep.mubr.msk.f32.mxu1 %vm357_vm2, %v5111_v33  ;;  %4085 = vmatprep.mubr.msk.f32.mxu0 %vm357_vm2, %v5807_v35  ;;  %v5812_v2 = vld [vmem:[#allocation23_spill] sm:$0xff]  ;;  %v5820_v33 = vld [vmem:[#allocation38_spill] sm:$0xff] }
  0xd5   : > { %3860 = vmatmul.mubr.msk.f32.gmra.mrb[30].mxu1 %vm357_vm2, %v5127_v48  ;;  %4086 = vmatmul.mubr.msk.f32.gmra.mrb[14].mxu0 %vm357_vm2, %v5808_v44  ;;  %v5813_v48 = vld [vmem:[#allocation25_spill] sm:$0xff] }
  0xd6   : > { %3864 = vmatprep.mubr.msk.f32.mxu1 %vm357_vm2, %v5809_v34  ;;  %4088 = vmatprep.mubr.msk.f32.mxu0 %vm357_vm2, %v5810_v27  ;;  %v5814_v34 = vld [vmem:[#allocation27_spill] sm:$0xff] }
  0xd9   : > { %3865 = vmatmul.mubr.msk.f32.vlgmr.msra.gmra.mrb[0].mxu1 %vm357_vm2, %v5811_v60  ;;  %4089 = vmatmul.mubr.msk.f32.gmra.mrb[16].mxu0 %vm357_vm2, %v5812_v2  ;;  %v5815_v60 = vld [vmem:[#allocation29_spill] sm:$0xff] }
  0xda   : > { %4163 = vmatpush3.msk.msra.mxu1 %vm422_vm0, %v4471_v1  ;;  %3867 = vmatprep.mubr.msk.f32.mxu1 %vm357_vm2, %v4519_v15  ;;  %v5816_v1 = vld [vmem:[#allocation31_spill] sm:$0xff]  ;;  %v5817_v15 = vld [vmem:[#allocation33_spill] sm:$0xff] }
  0xdb   : > { %4091 = vmatprep.mubr.msk.f32.mxu0 %vm357_vm2, %v5813_v48 }
  0xdd   : > { %3868 = vmatmul.mubr.msk.f32.gmra.mrb[2].mxu1 %vm357_vm2, %v4524_v18  ;;  %4092 = vmatmul.mubr.msk.f32.gmra.mrb[18].mxu0 %vm357_vm2, %v5814_v34  ;;  %v5818_v18 = vld [vmem:[#allocation35_spill] sm:$0xff] }
  0xde   : > { %3870 = vmatprep.mubr.msk.f32.mxu1 %vm357_vm2, %v4536_v25  ;;  %4094 = vmatprep.mubr.msk.f32.mxu0 %vm357_vm2, %v5815_v60  ;;  %v5819_v25 = vld [vmem:[#allocation37_spill] sm:$0xff] }
  0xe1   : > { %3871 = vmatmul.mubr.msk.f32.gmra.mrb[4].mxu1 %vm357_vm2, %v4539_v26  ;;  %4095 = vmatmul.mubr.msk.f32.gmra.mrb[20].mxu0 %vm357_vm2, %v5816_v1  ;;  %v1619_v26 = vrot.slane %v5095_v9, 1 }
  0xe2   : > { %3873 = vmatprep.mubr.msk.f32.mxu1 %vm357_vm2, %v4550_v31  ;;  %4097 = vmatprep.mubr.msk.f32.mxu0 %vm357_vm2, %v5817_v15  ;;  %v1620_v31 = vrot.slane %v5098_v6, 1 }
  0xe4   : > { %v5416_v15 = vsel %vm274_vm1, %v1619_v26, %v1620_v31 }
  0xe5   : > { %3874 = vmatmul.mubr.msk.f32.gmra.mrb[6].mxu1 %vm357_vm2, %v4553_v32  ;;  %4098 = vmatmul.mubr.msk.f32.gmra.mrb[22].mxu0 %vm357_vm2, %v5818_v18  ;;  %v5821_v32 = vld [vmem:[#allocation39_spill] sm:$0xff]  ;;  %v2431_v18 = vrot.slane %v5292_v62, 1 }
  0xe6   : > { %3876 = vmatprep.mubr.msk.f32.mxu1 %vm357_vm2, %v4590_v42  ;;  %4100 = vmatprep.mubr.msk.f32.mxu0 %vm357_vm2, %v5819_v25  ;;  %v1622_v42 = vrot.slane %v5116_v52, 1  ;;  %v2430_v25 = vrot.slane %v5281_v38, 1  ;;  %v2433_v52 = vrot.slane %v5419_v36, 1 }
  0xe8   : > { %v2432_v26 = vsel %vm274_vm1, %v2430_v25, %v2431_v18 }
  0xe9   : > { %3877 = vmatmul.mubr.msk.f32.gmra.mrb[8].mxu1 %vm357_vm2, %v4593_v43  ;;  %4101 = vmatmul.mubr.msk.f32.gmra.mrb[24].mxu0 %vm357_vm2, %v5820_v33  ;;  %v5822_v43 = vld [vmem:[#allocation40_spill] sm:$0xff] }
  0xea   : > { %3879 = vmatprep.mubr.msk.f32.mxu1 %vm357_vm2, %v4618_v50  ;;  %4103 = vmatprep.mubr.msk.f32.mxu0 %vm357_vm2, %v5821_v32  ;;  %v5430_v50 = vsel %vm274_vm1, %v1620_v31, %v1622_v42 }
  0xed   : > { %3880 = vmatmul.mubr.msk.f32.gmra.mrb[10].mxu1 %vm357_vm2, %v4621_v51  ;;  %4104 = vmatmul.mubr.msk.f32.gmra.mrb[26].mxu0 %vm357_vm2, %v5822_v43  ;;  %v2434_v51 = vsel %vm274_vm1, %v2431_v18, %v2433_v52 }
  0xee   : > { %3882 = vmatprep.mubr.msk.f32.mxu1 %vm357_vm2, %v4644_v58  ;;  %4106 = vmatprep.mubr.msk.f32.mxu0 %vm357_vm2, %v5416_v15  ;;  %v5826_v58 = vld [vmem:[#allocation33_spill] sm:$0xff] }
  0xf1   : > { %3883 = vmatmul.mubr.msk.f32.gmra.mrb[12].mxu1 %vm357_vm2, %v4647_v59  ;;  %4107 = vmatmul.mubr.msk.f32.gmra.mrb[28].mxu0 %vm357_vm2, %v5430_v50  ;;  %v5827_v59 = vld [vmem:[#allocation45_spill] sm:$0xff] }
  0xf2   : > { %3885 = vmatprep.mubr.msk.f32.mxu1 %vm357_vm2, %v4670_v3  ;;  %4109 = vmatprep.mubr.msk.f32.mxu0 %vm357_vm2, %v2432_v26  ;;  %v5828_v3 = vld [vmem:[#allocation35_spill] sm:$0xff] }
  0xf5   : > { %3886 = vmatmul.mubr.msk.f32.gmra.mrb[14].mxu1 %vm357_vm2, %v4673_v7  ;;  %4110 = vmatmul.mubr.msk.f32.gmra.mrb[30].mxu0 %vm357_vm2, %v2434_v51  ;;  %v5829_v7 = vld [vmem:[#allocation46_spill] sm:$0xff] }
  0xf6   : > { %3888 = vmatprep.mubr.msk.f32.mxu1 %vm357_vm2, %v4711_v28  ;;  %4114 = vmatprep.mubr.msk.f32.mxu0 %vm357_vm2, %v4766_v21  ;;  %v2701_v28 = vrot.slane %v5281_v38, 2  ;;  %v2704_v21 = vrot.slane %v5419_v36, 2 }
  0xf9   : > { %3889 = vmatmul.mubr.msk.f32.gmra.mrb[16].mxu1 %vm357_vm2, %v4714_v29  ;;  %4115 = vmatmul.mubr.msk.f32.vlgmr.msra.gmra.mrb[0].mxu0 %vm357_vm2, %v5783_v5  ;;  %v2702_v29 = vrot.slane %v5292_v62, 2 }
  0xfa   : > { %3891 = vmatprep.mubr.msk.f32.mxu1 %vm357_vm2, %v4739_v53  ;;  %4117 = vmatprep.mubr.msk.f32.mxu0 %vm357_vm2, %v5784_v11  ;;  %v5832_v53 = vld [vmem:[#allocation48_spill] sm:$0xff] }
  0xfd   : > { %3892 = vmatmul.mubr.msk.f32.gmra.mrb[18].mxu1 %vm357_vm2, %v4742_v55  ;;  %4118 = vmatmul.mubr.msk.f32.gmra.mrb[2].mxu0 %vm357_vm2, %v5785_v47  ;;  %v5833_v55 = vld [vmem:[#allocation49_spill] sm:$0xff] }
  0xfe   : > { %3894 = vmatprep.mubr.msk.f32.mxu1 %vm357_vm2, %v4771_v22  ;;  %4120 = vmatprep.mubr.msk.f32.mxu0 %vm357_vm2, %v5786_v63  ;;  %v5831_v22 = vld [vmem:[#allocation47_spill] sm:$0xff] }
 0x101   : > { %3895 = vmatmul.mubr.msk.f32.gmra.mrb[20].mxu1 %vm357_vm2, %v4774_v24  ;;  %4121 = vmatmul.mubr.msk.f32.gmra.mrb[4].mxu0 %vm357_vm2, %v5787_v23  ;;  %v2703_v24 = vsel %vm943_vm3, %v2701_v28, %v2702_v29 }
 0x102   : > { %3897 = vmatprep.mubr.msk.f32.mxu1 %vm357_vm2, %v4813_v8  ;;  %4123 = vmatprep.mubr.msk.f32.mxu0 %vm357_vm2, %v5788_v57  ;;  %v5830_v8 = vld [vmem:[#allocation37_spill] sm:$0xff] }
 0x105   : > { %3898 = vmatmul.mubr.msk.f32.gmra.mrb[22].mxu1 %vm357_vm2, %v4816_v10  ;;  %4124 = vmatmul.mubr.msk.f32.gmra.mrb[6].mxu0 %vm357_vm2, %v5789_v30  ;;  %v5834_v10 = vld [vmem:[#allocation50_spill] sm:$0xff] }
 0x106   : > { %3900 = vmatprep.mubr.msk.f32.mxu1 %vm357_vm2, %v4850_v46  ;;  %4126 = vmatprep.mubr.msk.f32.mxu0 %vm357_vm2, %v4915_v19  ;;  %v5823_v46 = vld [vmem:[#allocation34_spill] sm:$0xff] }
 0x109   : > { %3901 = vmatmul.mubr.msk.f32.gmra.mrb[24].mxu1 %vm357_vm2, %v4853_v12  ;;  %4127 = vmatmul.mubr.msk.f32.gmra.mrb[8].mxu0 %vm357_vm2, %v5790_v37  ;;  %v2705_v12 = vsel %vm943_vm3, %v2702_v29, %v2704_v21 }
 0x10a   : > { %3903 = vmatprep.mubr.msk.f32.mxu1 %vm357_vm2, %v4885_v20  ;;  %4129 = vmatprep.mubr.msk.f32.mxu0 %vm357_vm2, %v4950_v39 }
 0x10d   : > { %3904 = vmatmul.mubr.msk.f32.gmra.mrb[26].mxu1 %vm357_vm2, %v4888_v54  ;;  %4130 = vmatmul.mubr.msk.f32.gmra.mrb[10].mxu0 %vm357_vm2, %v4967_v41 }
 0x10e   : > { %3906 = vmatprep.mubr.msk.f32.mxu1 %vm357_vm2, %v4920_v40  ;;  %4132 = vmatprep.mubr.msk.f32.mxu0 %vm357_vm2, %v4974_v13 }
 0x111   : > { %3907 = vmatmul.mubr.msk.f32.gmra.mrb[28].mxu1 %vm357_vm2, %v5823_v46  ;;  %4133 = vmatmul.mubr.msk.f32.gmra.mrb[12].mxu0 %vm357_vm2, %v4990_v17 }
 0x112   : > { %3909 = vmatprep.mubr.msk.f32.mxu1 %vm357_vm2, %v5095_v9  ;;  %4135 = vmatprep.mubr.msk.f32.mxu0 %vm357_vm2, %v4994_v61  ;;  %v5824_v9 = vld [vmem:[#allocation41_spill] sm:$0xff] }
 0x115   : > { %3910 = vmatmul.mubr.msk.f32.gmra.mrb[30].mxu1 %vm357_vm2, %v5098_v6  ;;  %4136 = vmatmul.mubr.msk.f32.gmra.mrb[14].mxu0 %vm357_vm2, %v5007_v45  ;;  %v5825_v6 = vld [vmem:[#allocation44_spill] sm:$0xff] }
 0x116   : > { %3938 = vmatprep.mubr.msk.f32.mxu1 %vm357_vm2, %v5807_v35  ;;  %4138 = vmatprep.mubr.msk.f32.mxu0 %vm357_vm2, %v5011_v0 }
 0x119   : > { %3939 = vmatmul.mubr.msk.f32.vlgmr.msra.gmra.mrb[16].mxu1 %vm357_vm2, %v5808_v44  ;;  %4139 = vmatmul.mubr.msk.f32.gmra.mrb[16].mxu0 %vm357_vm2, %v5031_v16 }
 0x11a   : > { %3941 = vmatprep.mubr.msk.f32.mxu1 %vm357_vm2, %v5810_v27  ;;  %4141 = vmatprep.mubr.msk.f32.mxu0 %vm357_vm2, %v5824_v9 }
 0x11d   : > { %3942 = vmatmul.mubr.msk.f32.gmra.mrb[18].mxu1 %vm357_vm2, %v5812_v2  ;;  %4142 = vmatmul.mubr.msk.f32.gmra.mrb[18].mxu0 %vm357_vm2, %v5050_v56 }
 0x11e   : > { %3944 = vmatprep.mubr.msk.f32.mxu1 %vm357_vm2, %v5813_v48  ;;  %4144 = vmatprep.mubr.msk.f32.mxu0 %vm357_vm2, %v5054_v14  ;;  %v5582_v48 = vld [vmem:[%s5659_s2] ss:$0 sm:$0xff] }
 0x121   : > { %3945 = vmatmul.mubr.msk.f32.gmra.mrb[20].mxu1 %vm357_vm2, %v5814_v34  ;;  %4145 = vmatmul.mubr.msk.f32.gmra.mrb[20].mxu0 %vm357_vm2, %v5800_v4 }
 0x122   : > { %3947 = vmatprep.mubr.msk.f32.mxu1 %vm357_vm2, %v5815_v60  ;;  %4147 = vmatprep.mubr.msk.f32.mxu0 %vm357_vm2, %v5802_v49 }
 0x125   : > { %3948 = vmatmul.mubr.msk.f32.gmra.mrb[22].mxu1 %vm357_vm2, %v5816_v1  ;;  %4148 = vmatmul.mubr.msk.f32.gmra.mrb[22].mxu0 %vm357_vm2, %v5825_v6 }
 0x126   : > { %3950 = vmatprep.mubr.msk.f32.mxu1 %vm357_vm2, %v5826_v58  ;;  %4150 = vmatprep.mubr.msk.f32.mxu0 %vm357_vm2, %v5827_v59 }
 0x129   : > { %3951 = vmatmul.mubr.msk.f32.gmra.mrb[24].mxu1 %vm357_vm2, %v5828_v3  ;;  %4151 = vmatmul.mubr.msk.f32.gmra.mrb[24].mxu0 %vm357_vm2, %v5829_v7 }
 0x12a   : > { %3953 = vmatprep.mubr.msk.f32.mxu1 %vm357_vm2, %v5830_v8  ;;  %4153 = vmatprep.mubr.msk.f32.mxu0 %vm357_vm2, %v5831_v22 }
 0x12d   : > { %3954 = vmatmul.mubr.msk.f32.gmra.mrb[26].mxu1 %vm357_vm2, %v5820_v33  ;;  %4154 = vmatmul.mubr.msk.f32.gmra.mrb[26].mxu0 %vm357_vm2, %v5832_v53 }
 0x12e   : > { %3956 = vmatprep.mubr.msk.f32.mxu1 %vm357_vm2, %v5821_v32  ;;  %4156 = vmatprep.mubr.msk.f32.mxu0 %vm357_vm2, %v5833_v55 }
 0x131   : > { %3957 = vmatmul.mubr.msk.f32.gmra.mrb[28].mxu1 %vm357_vm2, %v5822_v43  ;;  %4157 = vmatmul.mubr.msk.f32.gmra.mrb[28].mxu0 %vm357_vm2, %v5834_v10 }
 0x132   : > { %3959 = vmatprep.mubr.msk.f32.mxu1 %vm357_vm2, %v5416_v15  ;;  %4159 = vmatprep.mubr.msk.f32.mxu0 %vm357_vm2, %v2703_v24 }
 0x135   : > { %3960 = vmatmul.mubr.msk.f32.gmra.mrb[30].mxu1 %vm357_vm2, %v5430_v50  ;;  %4160 = vmatmul.mubr.msk.f32.gmra.mrb[30].mxu0 %vm357_vm2, %v2705_v12 }
 0x1ac   : > { %v3866_v40 = vpop.f32.mrb[0].mxu1 }
 0x1ad   : > { %v1427_v20 = vpop.f32.mrb[1].mxu1 }
 0x1b0   : > { %v3869_v54 = vpop.f32.mrb[2].mxu1 }
 0x1b1   : > { %v1437_v19 = vpop.f32.mrb[3].mxu1 }
 0x1b4   : > { %v3872_v13 = vpop.f32.mrb[4].mxu1 }
 0x1b5   : > { %v1447_v39 = vpop.f32.mrb[5].mxu1 }
 0x1b8   : > { %v3875_v41 = vpop.f32.mrb[6].mxu1 }
 0x1b9   : > { %v1457_v17 = vpop.f32.mrb[7].mxu1 }
 0x1bc   : > { %v3878_v61 = vpop.f32.mrb[8].mxu1 }
 0x1bd   : > { %v1467_v45 = vpop.f32.mrb[9].mxu1 }
 0x1c0   : > { %v3881_v0 = vpop.f32.mrb[10].mxu1 }
 0x1c1   : > { %v1477_v16 = vpop.f32.mrb[11].mxu1 }
 0x1c4   : > { %v3884_v49 = vpop.f32.mrb[12].mxu1 }
 0x1c5   : > { %v1487_v56 = vpop.f32.mrb[13].mxu1 }
 0x1c8   : > { %v3887_v14 = vpop.f32.mrb[14].mxu1 }
 0x1c9   : > { %v5576_v36 = vpop.f32.mrb[15].mxu1 }
 0x1cc   : > { %v4116_v33 = vpop.f32.mrb[0].mxu0 }
 0x1cd   : > { %v4164_v5 = vadd.f32 %v4116_v33, %v3866_v40  ;;  %v2781_v11 = vpop.f32.mrb[1].mxu0 }
 0x1ce   : > { %v4165_v47 = vadd.f32 %v2781_v11, %v1427_v20 }
 0x1cf   : > { %v2980_v63 = vadd.f32 %v4164_v5, %v5582_v48 }
 0x1d0   : > { %v2979_v23 = vadd.f32 %v4165_v47, %v5582_v48  ;;  %v4119_v57 = vpop.f32.mrb[2].mxu0 }
 0x1d1   : > { %3012 = vst [vmem:[%s5587_s16 + $0x8] sm:$0xff] %v2980_v63  ;;  %v4166_v30 = vadd.f32 %v4119_v57, %v3869_v54  ;;  %v2791_v38 = vpop.f32.mrb[3].mxu0 }
 0x1d2   : > { %3011 = vst [vmem:[%s5587_s16] sm:$0xff] %v2979_v23  ;;  %v4167_v37 = vadd.f32 %v2791_v38, %v1437_v19 }
 0x1d3   : > { %v2982_v62 = vadd.f32 %v4166_v30, %v5582_v48 }
 0x1d4   : > { %v2981_v4 = vadd.f32 %v4167_v37, %v5582_v48  ;;  %v4122_v35 = vpop.f32.mrb[4].mxu0 }
 0x1d5   : > { %3014 = vst [vmem:[%s5587_s16 + $0x18] sm:$0xff] %v2982_v62  ;;  %v4168_v44 = vadd.f32 %v4122_v35, %v3872_v13  ;;  %v2801_v27 = vpop.f32.mrb[5].mxu0 }
 0x1d6   : > { %3013 = vst [vmem:[%s5587_s16 + $0x10] sm:$0xff] %v2981_v4  ;;  %v4169_v2 = vadd.f32 %v2801_v27, %v1447_v39 }
 0x1d7   : > { %v2984_v34 = vadd.f32 %v4168_v44, %v5582_v48 }
 0x1d8   : > { %v2983_v60 = vadd.f32 %v4169_v2, %v5582_v48  ;;  %v4125_v1 = vpop.f32.mrb[6].mxu0 }
 0x1d9   : > { %3016 = vst [vmem:[%s5587_s16 + $0x28] sm:$0xff] %v2984_v34  ;;  %v4170_v15 = vadd.f32 %v4125_v1, %v3875_v41  ;;  %v2811_v18 = vpop.f32.mrb[7].mxu0 }
 0x1da   : > { %3015 = vst [vmem:[%s5587_s16 + $0x20] sm:$0xff] %v2983_v60  ;;  %v4171_v25 = vadd.f32 %v2811_v18, %v1457_v17 }
 0x1db   : > { %v2986_v31 = vadd.f32 %v4170_v15, %v5582_v48 }
 0x1dc   : > { %v2985_v32 = vadd.f32 %v4171_v25, %v5582_v48  ;;  %v4128_v42 = vpop.f32.mrb[8].mxu0 }
 0x1dd   : > { %3018 = vst [vmem:[%s5587_s16 + $0x38] sm:$0xff] %v2986_v31  ;;  %v4172_v43 = vadd.f32 %v4128_v42, %v3878_v61  ;;  %v2821_v50 = vpop.f32.mrb[9].mxu0 }
 0x1de   : > { %3017 = vst [vmem:[%s5587_s16 + $0x30] sm:$0xff] %v2985_v32  ;;  %v4173_v52 = vadd.f32 %v2821_v50, %v1467_v45 }
 0x1df   : > { %v2988_v26 = vadd.f32 %v4172_v43, %v5582_v48 }
 0x1e0   : > { %v2987_v51 = vadd.f32 %v4173_v52, %v5582_v48  ;;  %v4131_v46 = vpop.f32.mrb[10].mxu0 }
 0x1e1   : > { %3020 = vst [vmem:[%s5587_s16 + $0x48] sm:$0xff] %v2988_v26  ;;  %v4174_v9 = vadd.f32 %v4131_v46, %v3881_v0  ;;  %v2831_v6 = vpop.f32.mrb[11].mxu0 }
 0x1e2   : > { %3019 = vst [vmem:[%s5587_s16 + $0x40] sm:$0xff] %v2987_v51  ;;  %v4175_v58 = vadd.f32 %v2831_v6, %v1477_v16 }
 0x1e3   : > { %v2990_v59 = vadd.f32 %v4174_v9, %v5582_v48 }
 0x1e4   : > { %v2989_v3 = vadd.f32 %v4175_v58, %v5582_v48  ;;  %v4134_v7 = vpop.f32.mrb[12].mxu0 }
 0x1e5   : > { %3022 = vst [vmem:[%s5587_s16 + $0x58] sm:$0xff] %v2990_v59  ;;  %v4176_v8 = vadd.f32 %v4134_v7, %v3884_v49  ;;  %v2841_v22 = vpop.f32.mrb[13].mxu0 }
 0x1e6   : > { %3021 = vst [vmem:[%s5587_s16 + $0x50] sm:$0xff] %v2989_v3  ;;  %v4177_v28 = vadd.f32 %v2841_v22, %v1487_v56 }
 0x1e7   : > { %v2992_v29 = vadd.f32 %v4176_v8, %v5582_v48 }
 0x1e8   : > { %v2991_v53 = vadd.f32 %v4177_v28, %v5582_v48  ;;  %v4137_v55 = vpop.f32.mrb[14].mxu0 }
 0x1e9   : > { %3024 = vst [vmem:[%s5587_s16 + $0x68] sm:$0xff] %v2992_v29  ;;  %v4178_v21 = vadd.f32 %v4137_v55, %v3887_v14  ;;  %v2851_v24 = vpop.f32.mrb[15].mxu0 }
 0x1ea   : > { %3023 = vst [vmem:[%s5587_s16 + $0x60] sm:$0xff] %v2991_v53  ;;  %v4179_v10 = vadd.f32 %v2851_v24, %v5576_v36 }
 0x1eb   : > { %v2994_v12 = vadd.f32 %v4178_v21, %v5582_v48 }
 0x1ec   : > { %v3940_v40 = vpop.f32.mrb[16].mxu1  ;;  %v2993_v20 = vadd.f32 %v4179_v10, %v5582_v48  ;;  %v4140_v54 = vpop.f32.mrb[16].mxu0 }
 0x1ed   : > { %v1779_v19 = vpop.f32.mrb[17].mxu1  ;;  %3026 = vst [vmem:[%s5587_s16 + $0x78] sm:$0xff] %v2994_v12  ;;  %v4180_v13 = vadd.f32 %v4140_v54, %v3940_v40  ;;  %v2861_v39 = vpop.f32.mrb[17].mxu0 }
 0x1ee   : > { %3025 = vst [vmem:[%s5587_s16 + $0x70] sm:$0xff] %v2993_v20  ;;  %v4181_v41 = vadd.f32 %v2861_v39, %v1779_v19 }
 0x1ef   : > { %v2996_v17 = vadd.f32 %v4180_v13, %v5582_v48 }
 0x1f0   : > { %v3943_v61 = vpop.f32.mrb[18].mxu1  ;;  %v2995_v45 = vadd.f32 %v4181_v41, %v5582_v48  ;;  %v4143_v0 = vpop.f32.mrb[18].mxu0 }
 0x1f1   : > { %v1789_v16 = vpop.f32.mrb[19].mxu1  ;;  %3028 = vst [vmem:[%s5587_s16 + $0x88] sm:$0xff] %v2996_v17  ;;  %v4182_v49 = vadd.f32 %v4143_v0, %v3943_v61  ;;  %v2871_v56 = vpop.f32.mrb[19].mxu0 }
 0x1f2   : > { %3027 = vst [vmem:[%s5587_s16 + $0x80] sm:$0xff] %v2995_v45  ;;  %v4183_v14 = vadd.f32 %v2871_v56, %v1789_v16 }
 0x1f3   : > { %v2998_v36 = vadd.f32 %v4182_v49, %v5582_v48 }
 0x1f4   : > { %v3946_v33 = vpop.f32.mrb[20].mxu1  ;;  %v2997_v5 = vadd.f32 %v4183_v14, %v5582_v48  ;;  %v4146_v11 = vpop.f32.mrb[20].mxu0 }
 0x1f5   : > { %v1799_v47 = vpop.f32.mrb[21].mxu1  ;;  %3030 = vst [vmem:[%s5587_s16 + $0x98] sm:$0xff] %v2998_v36  ;;  %v4184_v63 = vadd.f32 %v4146_v11, %v3946_v33  ;;  %v2881_v23 = vpop.f32.mrb[21].mxu0 }
 0x1f6   : > { %3029 = vst [vmem:[%s5587_s16 + $0x90] sm:$0xff] %v2997_v5  ;;  %v4185_v57 = vadd.f32 %v2881_v23, %v1799_v47 }
 0x1f7   : > { %v3000_v30 = vadd.f32 %v4184_v63, %v5582_v48 }
 0x1f8   : > { %v3949_v38 = vpop.f32.mrb[22].mxu1  ;;  %v2999_v37 = vadd.f32 %v4185_v57, %v5582_v48  ;;  %v4149_v62 = vpop.f32.mrb[22].mxu0 }
 0x1f9   : > { %v1809_v4 = vpop.f32.mrb[23].mxu1  ;;  %3032 = vst [vmem:[%s5587_s16 + $0xa8] sm:$0xff] %v3000_v30  ;;  %v4186_v35 = vadd.f32 %v4149_v62, %v3949_v38  ;;  %v2891_v44 = vpop.f32.mrb[23].mxu0 }
 0x1fa   : > { %3031 = vst [vmem:[%s5587_s16 + $0xa0] sm:$0xff] %v2999_v37  ;;  %v4187_v27 = vadd.f32 %v2891_v44, %v1809_v4 }
 0x1fb   : > { %v3002_v2 = vadd.f32 %v4186_v35, %v5582_v48 }
 0x1fc   : > { %v3952_v34 = vpop.f32.mrb[24].mxu1  ;;  %v3001_v60 = vadd.f32 %v4187_v27, %v5582_v48  ;;  %v4152_v1 = vpop.f32.mrb[24].mxu0 }
 0x1fd   : > { %v1819_v15 = vpop.f32.mrb[25].mxu1  ;;  %3034 = vst [vmem:[%s5587_s16 + $0xb8] sm:$0xff] %v3002_v2  ;;  %v4188_v18 = vadd.f32 %v4152_v1, %v3952_v34  ;;  %v2901_v25 = vpop.f32.mrb[25].mxu0 }
 0x1fe   : > { %3033 = vst [vmem:[%s5587_s16 + $0xb0] sm:$0xff] %v3001_v60  ;;  %v4189_v31 = vadd.f32 %v2901_v25, %v1819_v15 }
 0x1ff   : > { %v3004_v32 = vadd.f32 %v4188_v18, %v5582_v48 }
 0x200   : > { %v3955_v42 = vpop.f32.mrb[26].mxu1  ;;  %v3003_v43 = vadd.f32 %v4189_v31, %v5582_v48  ;;  %v4155_v50 = vpop.f32.mrb[26].mxu0 }
 0x201   : > { %v1829_v52 = vpop.f32.mrb[27].mxu1  ;;  %3036 = vst [vmem:[%s5587_s16 + $0xc8] sm:$0xff] %v3004_v32  ;;  %v4190_v26 = vadd.f32 %v4155_v50, %v3955_v42  ;;  %v2911_v51 = vpop.f32.mrb[27].mxu0 }
 0x202   : > { %3035 = vst [vmem:[%s5587_s16 + $0xc0] sm:$0xff] %v3003_v43  ;;  %v4191_v46 = vadd.f32 %v2911_v51, %v1829_v52 }
 0x203   : > { %v3006_v9 = vadd.f32 %v4190_v26, %v5582_v48 }
 0x204   : > { %v3958_v6 = vpop.f32.mrb[28].mxu1  ;;  %v3005_v58 = vadd.f32 %v4191_v46, %v5582_v48  ;;  %v4158_v59 = vpop.f32.mrb[28].mxu0 }
 0x205   : > { %v1839_v3 = vpop.f32.mrb[29].mxu1  ;;  %3038 = vst [vmem:[%s5587_s16 + $0xd8] sm:$0xff] %v3006_v9  ;;  %v4192_v7 = vadd.f32 %v4158_v59, %v3958_v6  ;;  %v2921_v8 = vpop.f32.mrb[29].mxu0 }
 0x206   : > { %3037 = vst [vmem:[%s5587_s16 + $0xd0] sm:$0xff] %v3005_v58  ;;  %v4193_v22 = vadd.f32 %v2921_v8, %v1839_v3 }
 0x207   : > { %v3008_v28 = vadd.f32 %v4192_v7, %v5582_v48 }
 0x208   : > { %v3961_v29 = vpop.f32.mrb[30].mxu1  ;;  %v3007_v53 = vadd.f32 %v4193_v22, %v5582_v48  ;;  %v4161_v55 = vpop.f32.mrb[30].mxu0 }
 0x209   : > { %v1849_v21 = vpop.f32.mrb[31].mxu1  ;;  %3040 = vst [vmem:[%s5587_s16 + $0xe8] sm:$0xff] %v3008_v28  ;;  %v4194_v24 = vadd.f32 %v4161_v55, %v3961_v29  ;;  %v2931_v10 = vpop.f32.mrb[31].mxu0 }
 0x20a   : > { %3039 = vst [vmem:[%s5587_s16 + $0xe0] sm:$0xff] %v3007_v53  ;;  %v4195_v12 = vadd.f32 %v2931_v10, %v1849_v21 }
 0x20b   : > { %v3010_v40 = vadd.f32 %v4194_v24, %v5582_v48 }
 0x20c   : > { %v3009_v20 = vadd.f32 %v4195_v12, %v5582_v48 }
 0x20d   : > { %3042 = vst [vmem:[%s5587_s16 + $0xf8] sm:$0xff] %v3010_v40 }
 0x20e   : > { %3041 = vst [vmem:[%s5587_s16 + $0xf0] sm:$0xff] %v3009_v20 }
 0x20f PF: > { %s13_s12 = sadd.s32 1, %s4435_s12  }
 0x210   : > { %p10_p4 = scmp.ge.s32.totalorder %s13_s12, 4  }
 0x212   :  { %12 = sbr.rel (!%p10_p4) target bundleno = 1 (0x1), region = 70 }

</bundles_post_ra>
